<compile_context>
chip_gen: v5e
topology: v5e:2x2
jax: 0.10.0
libtpu: 0.0.40
codegen_flags: <defaults>
</compile_context>

<pallas_src>
import functools
import math

import jax
import jax.numpy as jnp
from jax.experimental import pallas as pl
from jax.experimental.pallas import tpu as pltpu


# ----------------------------------------------------------------------------
# Tiling constants / helpers
# ----------------------------------------------------------------------------
_TM, _TN = 1024, 1024       # matmul row / col tile targets
_TK = 2048                  # contraction tile target (only when K > _FULL_K_MAX)
_FULL_K_MAX = 1536          # single-pass (full-row) contraction when K <= this
_TQ, _TKV = 256, 512        # flash-attention tile targets
_LN_ROWS = 1024             # standalone layernorm row tile (ln_post only)
_VMEM_LIMIT = 48 * 1024 * 1024   # < v7x's 64 MiB physical; plenty on v5e/v6e


def _tile_exact(dim, target, align):
    """Largest align-multiple divisor of dim that is <= target, else full dim.

    Used for reduction (K) axes where partial blocks would corrupt results.
    """
    if dim <= target:
        return dim
    t = (target // align) * align
    while t >= align:
        if dim % t == 0:
            return t
        t -= align
    return dim


def _tile_ragged(dim, target, align):
    """Tile for axes that tolerate a ragged (clipped) last block."""
    if dim <= target:
        return dim
    return (target // align) * align


# ----------------------------------------------------------------------------
# In-kernel helpers
# ----------------------------------------------------------------------------
def _gelu(x):
    # tanh-approx GELU (== torch gelu(approximate='tanh')).  tanh runs on the
    # EUP slot and overlaps the MXU.
    c = 0.7978845608028654  # sqrt(2/pi)
    return 0.5 * x * (1.0 + jnp.tanh(c * (x + 0.044715 * x * x * x)))


# ----------------------------------------------------------------------------
# Fused tiled matmul: out = act(LN?(x) @ w + b) [+ pos] [+ residual]
# ----------------------------------------------------------------------------
def _linear_kernel(*refs, activation, has_ln, has_pos, has_residual,
                   tiled_k, eps):
    it = iter(refs)
    x_ref = next(it)
    w_ref = next(it)
    b_ref = next(it)
    ln_g_ref = next(it) if has_ln else None
    ln_b_ref = next(it) if has_ln else None
    pos_ref = next(it) if has_pos else None
    res_ref = next(it) if has_residual else None
    o_ref = next(it)
    acc_ref = next(it) if tiled_k else None

    x = x_ref[0]                                          # (tm, tk)
    if has_ln:
        # Fused pre-LayerNorm: the full-K row tile holds the whole row.
        xf = x.astype(jnp.float32)
        mu = jnp.mean(xf, axis=-1, keepdims=True)
        xc = xf - mu
        var = jnp.mean(xc * xc, axis=-1, keepdims=True)
        xn = xc * jax.lax.rsqrt(var + eps)
        x = (xn * ln_g_ref[...] + ln_b_ref[...]).astype(x_ref.dtype)

    contrib = jnp.dot(x, w_ref[...], preferred_element_type=jnp.float32)

    def epilogue(acc):
        y = acc + b_ref[...].astype(jnp.float32)
        if activation == "gelu":
            y = _gelu(y)
        if has_pos:
            y = y + pos_ref[...].astype(jnp.float32)
        if has_residual:
            y = y + res_ref[0].astype(jnp.float32)
        o_ref[0] = y.astype(o_ref.dtype)

    if not tiled_k:
        # Single MXU pass per output tile: no accumulator round-trips.
        epilogue(contrib)
    else:
        k = pl.program_id(3)

        @pl.when(k == 0)
        def _():
            acc_ref[...] = jnp.zeros_like(acc_ref)

        acc_ref[...] += contrib

        @pl.when(k == pl.num_programs(3) - 1)
        def _():
            epilogue(acc_ref[...])


def linear(x, w, b, *, activation=None, residual=None, pos=None, ln=None,
           out_dtype=jnp.bfloat16):
    """x: (M, K) or (B, S, K) bf16, w: (K, N) bf16, b: (N,) f32 -> same-rank out.

    Fused options: pre-LayerNorm (ln=(gamma, beta), needs single-pass K),
    GELU, positional add (pos: (S, N), broadcast over batch, needs 3-D x),
    residual add.  f32 accumulation, bf16 MXU operands.
    """
    was_2d = (x.ndim == 2)
    x3 = x[None] if was_2d else x
    B, M, K = x3.shape
    N = w.shape[1]

    res3 = None
    if residual is not None:
        res3 = residual.reshape(B, M, N)
    if pos is not None:
        assert pos.shape == (M, N), (pos.shape, (M, N))

    full_k = K <= _FULL_K_MAX
    if ln is not None:
        assert full_k, "fused pre-LN requires a single-pass (full-K) contraction"
    tm = _tile_ragged(M, _TM, 8)
    tn = _tile_ragged(N, _TN, 128)

    if full_k:
        grid = (B, pl.cdiv(M, tm), pl.cdiv(N, tn))
        x_spec = pl.BlockSpec((1, tm, K), lambda bb, i, j: (bb, i, 0))
        w_spec = pl.BlockSpec((K, tn), lambda bb, i, j: (0, j))
        b_spec = pl.BlockSpec((1, tn), lambda bb, i, j: (0, j))
        ln_spec = pl.BlockSpec((1, K), lambda bb, i, j: (0, 0))
        pos_spec = pl.BlockSpec((tm, tn), lambda bb, i, j: (i, j))
        res_spec = pl.BlockSpec((1, tm, tn), lambda bb, i, j: (bb, i, j))
        out_spec = pl.BlockSpec((1, tm, tn), lambda bb, i, j: (bb, i, j))
        scratch = []
        semantics = ("parallel", "parallel", "parallel")
    else:
        tk = _tile_exact(K, _TK, 128)          # K must tile exactly
        grid = (B, pl.cdiv(M, tm), pl.cdiv(N, tn), K // tk)
        x_spec = pl.BlockSpec((1, tm, tk), lambda bb, i, j, k: (bb, i, k))
        w_spec = pl.BlockSpec((tk, tn), lambda bb, i, j, k: (k, j))
        b_spec = pl.BlockSpec((1, tn), lambda bb, i, j, k: (0, j))
        ln_spec = None
        pos_spec = pl.BlockSpec((tm, tn), lambda bb, i, j, k: (i, j))
        res_spec = pl.BlockSpec((1, tm, tn), lambda bb, i, j, k: (bb, i, j))
        out_spec = pl.BlockSpec((1, tm, tn), lambda bb, i, j, k: (bb, i, j))
        scratch = [pltpu.VMEM((tm, tn), jnp.float32)]
        semantics = ("parallel", "parallel", "parallel", "arbitrary")

    args = [x3, w, b.reshape(1, N)]
    in_specs = [x_spec, w_spec, b_spec]
    if ln is not None:
        g_ln, b_ln = ln
        args += [g_ln.reshape(1, K), b_ln.reshape(1, K)]
        in_specs += [ln_spec, ln_spec]
    if pos is not None:
        args.append(pos)
        in_specs.append(pos_spec)
    if residual is not None:
        args.append(res3)
        in_specs.append(res_spec)

    out = pl.pallas_call(
        functools.partial(_linear_kernel, activation=activation,
                          has_ln=ln is not None, has_pos=pos is not None,
                          has_residual=residual is not None,
                          tiled_k=not full_k, eps=1e-5),
        out_shape=jax.ShapeDtypeStruct((B, M, N), out_dtype),
        grid=grid,
        in_specs=in_specs,
        out_specs=out_spec,
        scratch_shapes=scratch,
        compiler_params=pltpu.CompilerParams(
            dimension_semantics=semantics,
            vmem_limit_bytes=_VMEM_LIMIT),
    )(*args)
    return out[0] if was_2d else out


# ----------------------------------------------------------------------------
# Row-tiled LayerNorm (only used standalone for ln_post)
# ----------------------------------------------------------------------------
def _layernorm_kernel(x_ref, g_ref, b_ref, o_ref, *, eps):
    x = x_ref[...].astype(jnp.float32)
    mu = jnp.mean(x, axis=-1, keepdims=True)
    xc = x - mu
    var = jnp.mean(xc * xc, axis=-1, keepdims=True)
    y = xc * jax.lax.rsqrt(var + eps)
    o_ref[...] = (y * g_ref[...] + b_ref[...]).astype(o_ref.dtype)


def layernorm(x, g, b, eps=1e-5, out_dtype=jnp.bfloat16):
    M, N = x.shape
    tm = _tile_ragged(M, _LN_ROWS, 8)
    return pl.pallas_call(
        functools.partial(_layernorm_kernel, eps=eps),
        out_shape=jax.ShapeDtypeStruct((M, N), out_dtype),
        grid=(pl.cdiv(M, tm),),
        in_specs=[
            pl.BlockSpec((tm, N), lambda i: (i, 0)),
            pl.BlockSpec((1, N), lambda i: (0, 0)),
            pl.BlockSpec((1, N), lambda i: (0, 0)),
        ],
        out_specs=pl.BlockSpec((tm, N), lambda i: (i, 0)),
        compiler_params=pltpu.CompilerParams(
            dimension_semantics=("parallel",),
            vmem_limit_bytes=_VMEM_LIMIT),
    )(x, g.reshape(1, N), b.reshape(1, N))


# ----------------------------------------------------------------------------
# Flash attention over the fused QKV activation
# ----------------------------------------------------------------------------
def _flash_attn_kernel(q_ref, k_ref, v_ref, o_ref, q_sc, m_sc, l_sc, acc_sc, *,
                       n_head, dh, sm_scale, kv_len):
    ki = pl.program_id(2)
    n_kv = pl.num_programs(2)
    tq = q_ref.shape[1]
    tk = k_ref.shape[1]

    @pl.when(ki == 0)
    def _():
        m_sc[...] = jnp.full(m_sc.shape, -jnp.inf, jnp.float32)
        l_sc[...] = jnp.zeros(l_sc.shape, jnp.float32)
        acc_sc[...] = jnp.zeros(acc_sc.shape, jnp.float32)
        # Hoisted out of the kv loop: the (tq, H*dh) -> (H, tq, dh) relayout and
        # the softmax scale are constant across ki; scale Q once instead of
        # scaling every (H, tq, tk) score tile.
        q = jnp.swapaxes(q_ref[0].reshape(tq, n_head, dh), 0, 1)
        q_sc[...] = (q.astype(jnp.float32) * sm_scale).astype(q_sc.dtype)

    k = jnp.swapaxes(k_ref[0].reshape(tk, n_head, dh), 0, 1)     # (H, tk, dh)
    v = jnp.swapaxes(v_ref[0].reshape(tk, n_head, dh), 0, 1)
    s = jnp.einsum("hqd,hkd->hqk", q_sc[...], k,
                   preferred_element_type=jnp.float32)           # (H, tq, tk)

    def update(s_blk, v_blk):
        m_prev = m_sc[...]
        m_new = jnp.maximum(m_prev, jnp.max(s_blk, axis=-1, keepdims=True))
        alpha = jnp.exp(m_prev - m_new)
        p = jnp.exp(s_blk - m_new)
        l_sc[...] = alpha * l_sc[...] + jnp.sum(p, axis=-1, keepdims=True)
        acc_sc[...] = alpha * acc_sc[...] + jnp.einsum(
            "hqk,hkd->hqd", p.astype(v_blk.dtype), v_blk,
            preferred_element_type=jnp.float32)
        m_sc[...] = m_new

    if kv_len is None:
        update(s, v)
    else:
        # Only the last kv tile is ragged; interior tiles skip the masking ops.
        @pl.when(ki < n_kv - 1)
        def _():
            update(s, v)

        @pl.when(ki == n_kv - 1)
        def _():
            base = ki * tk
            lane = base + jax.lax.broadcasted_iota(jnp.int32, (1, 1, tk), 2)
            row = base + jax.lax.broadcasted_iota(jnp.int32, (1, tk, 1), 1)
            s_m = jnp.where(lane < kv_len, s, -1e30)
            v_m = jnp.where(row < kv_len, v, jnp.zeros_like(v))
            update(s_m, v_m)

    @pl.when(ki == n_kv - 1)
    def _():
        out = acc_sc[...] * pl.reciprocal(l_sc[...], approx=True)   # (H, tq, dh)
        o_ref[0] = jnp.swapaxes(out, 0, 1).reshape(tq, n_head * dh).astype(o_ref.dtype)


def flash_attention(qkv, n_head):
    """qkv: (B, S, 3*n_state) bf16 (q|k|v concatenated) -> (B, S, n_state) bf16."""
    B, S, C3 = qkv.shape
    n_state = C3 // 3
    dh = n_state // n_head
    sm_scale = float(dh) ** -0.5   # == Whisper's (dh**-0.25 on q) * (dh**-0.25 on k)

    tq = _tile_ragged(S, _TQ, 8)
    tk = _tile_ragged(S, _TKV, 8)
    kv_len = S if (S % tk) else None   # mask only needed for a ragged last kv tile

    if n_state % 128 == 0:
        # Slice q/k/v directly out of the fused projection via the BlockSpec
        # column-block index: zero extra HBM traffic.
        q_in = k_in = v_in = qkv
        cq, ck, cv = 0, 1, 2
    else:
        # Small/test widths: an n_state-wide column block would violate the
        # 128-lane block rule, so slice in the wrapper instead.
        q_in = qkv[:, :, :n_state]
        k_in = qkv[:, :, n_state:2 * n_state]
        v_in = qkv[:, :, 2 * n_state:]
        cq = ck = cv = 0

    return pl.pallas_call(
        functools.partial(_flash_attn_kernel, n_head=n_head, dh=dh,
                          sm_scale=sm_scale, kv_len=kv_len),
        out_shape=jax.ShapeDtypeStruct((B, S, n_state), jnp.bfloat16),
        grid=(B, pl.cdiv(S, tq), pl.cdiv(S, tk)),
        in_specs=[
            pl.BlockSpec((1, tq, n_state), lambda b, qi, ki: (b, qi, cq)),
            pl.BlockSpec((1, tk, n_state), lambda b, qi, ki: (b, ki, ck)),
            pl.BlockSpec((1, tk, n_state), lambda b, qi, ki: (b, ki, cv)),
        ],
        out_specs=pl.BlockSpec((1, tq, n_state), lambda b, qi, ki: (b, qi, 0)),
        scratch_shapes=[
            pltpu.VMEM((n_head, tq, dh), jnp.bfloat16),   # scaled, head-split Q
            pltpu.VMEM((n_head, tq, 1), jnp.float32),     # running max
            pltpu.VMEM((n_head, tq, 1), jnp.float32),     # running denom
            pltpu.VMEM((n_head, tq, dh), jnp.float32),    # running numerator
        ],
        compiler_params=pltpu.CompilerParams(
            dimension_semantics=("parallel", "parallel", "arbitrary"),
            vmem_limit_bytes=_VMEM_LIMIT),
    )(q_in, k_in, v_in)


# ----------------------------------------------------------------------------
# Conv1d via im2col on NWC layout (patch extraction in the wrapper; the matmul,
# bias, GELU and positional add run inside the Pallas linear kernel).
# ----------------------------------------------------------------------------
def _im2col_nwc(x, kernel_size, stride, padding):
    """x: (B, T, C) -> (B, T_out, kernel_size*C), k-major / c-fastest features."""
    # TODO(synk): replace with in-kernel tap accumulation (3 shifted matmuls over
    # even/odd rows) to avoid materializing the 3x-wide patch tensor for conv2.
    B, T, C = x.shape
    xp = jnp.pad(x, ((0, 0), (padding, padding), (0, 0)))
    t_out = (T + 2 * padding - kernel_size) // stride + 1
    cols = [xp[:, k:k + stride * (t_out - 1) + 1:stride, :]
            for k in range(kernel_size)]
    patches = jnp.concatenate(cols, axis=-1)          # (B, T_out, K*C)
    return patches, t_out


# ----------------------------------------------------------------------------
# Parameters (deterministic synthetic init — shapes follow Whisper's encoder)
# ----------------------------------------------------------------------------
def sinusoids(length, channels, max_timescale=10000.0):
    assert channels % 2 == 0
    log_timescale_increment = math.log(max_timescale) / (channels // 2 - 1)
    inv_timescales = jnp.exp(-log_timescale_increment *
                             jnp.arange(channels // 2, dtype=jnp.float32))
    scaled_time = (jnp.arange(length, dtype=jnp.float32)[:, None] *
                   inv_timescales[None, :])
    return jnp.concatenate([jnp.sin(scaled_time), jnp.cos(scaled_time)], axis=1)


def init_params(key, n_mels, n_state, n_layer):
    def dense(k, shape, scale=0.05):
        return scale * jax.random.normal(k, shape, dtype=jnp.float32)

    keys = iter(jax.random.split(key, 8 + 16 * n_layer))
    params = {
        "conv1_w": dense(next(keys), (n_state, n_mels, 3)),
        "conv1_b": dense(next(keys), (n_state,)),
        "conv2_w": dense(next(keys), (n_state, n_state, 3)),
        "conv2_b": dense(next(keys), (n_state,)),
        "ln_post_g": jnp.ones((n_state,), jnp.float32),
        "ln_post_b": jnp.zeros((n_state,), jnp.float32),
        "blocks": [],
    }
    for _ in range(n_layer):
        blk = {
            "attn_ln_g": jnp.ones((n_state,), jnp.float32),
            "attn_ln_b": jnp.zeros((n_state,), jnp.float32),
            "wq": dense(next(keys), (n_state, n_state)),
            "bq": dense(next(keys), (n_state,)),
            "wk": dense(next(keys), (n_state, n_state)),   # Whisper key proj: no bias
            "wv": dense(next(keys), (n_state, n_state)),
            "bv": dense(next(keys), (n_state,)),
            "wo": dense(next(keys), (n_state, n_state)),
            "bo": dense(next(keys), (n_state,)),
            "mlp_ln_g": jnp.ones((n_state,), jnp.float32),
            "mlp_ln_b": jnp.zeros((n_state,), jnp.float32),
            "w1": dense(next(keys), (n_state, 4 * n_state)),
            "b1": dense(next(keys), (4 * n_state,)),
            "w2": dense(next(keys), (4 * n_state, n_state)),
            "b2": dense(next(keys), (n_state,)),
        }
        params["blocks"].append(blk)
    return params


def prepare_params(params):
    """One-time weight prep: matmul layouts, fused QKV, bf16 MXU operands."""
    def conv_mat(w):   # (out, in, k) -> (k*in, out), matching the im2col layout
        return jnp.transpose(w, (2, 1, 0)).reshape(-1, w.shape[0]).astype(jnp.bfloat16)

    prep = {
        "conv1_w": conv_mat(params["conv1_w"]), "conv1_b": params["conv1_b"],
        "conv2_w": conv_mat(params["conv2_w"]), "conv2_b": params["conv2_b"],
        "ln_post_g": params["ln_post_g"], "ln_post_b": params["ln_post_b"],
        "blocks": [],
    }
    for blk in params["blocks"]:
        prep["blocks"].append({
            "attn_ln_g": blk["attn_ln_g"], "attn_ln_b": blk["attn_ln_b"],
            "wqkv": jnp.concatenate([blk["wq"], blk["wk"], blk["wv"]],
                                    axis=1).astype(jnp.bfloat16),
            "bqkv": jnp.concatenate([blk["bq"], jnp.zeros_like(blk["bq"]),
                                     blk["bv"]]),
            "wo": blk["wo"].astype(jnp.bfloat16), "bo": blk["bo"],
            "mlp_ln_g": blk["mlp_ln_g"], "mlp_ln_b": blk["mlp_ln_b"],
            "w1": blk["w1"].astype(jnp.bfloat16), "b1": blk["b1"],
            "w2": blk["w2"].astype(jnp.bfloat16), "b2": blk["b2"],
        })
    return prep


# ----------------------------------------------------------------------------
# AudioEncoderTRT.forward
# ----------------------------------------------------------------------------
def audio_encoder_forward(params, positional_embedding, x, n_head):
    # --- wrapper semantics: slice the pos-embed to the runtime audio context ---
    B, n_mels, T = x.shape
    n_audio_ctx = T // 2
    pos = positional_embedding[-n_audio_ctx:, :].astype(jnp.bfloat16)

    n_state = params["conv1_b"].shape[0]

    # --- conv1 (k=3, s=1, p=1) + GELU; only the small mel input is transposed ---
    x_nwc = jnp.transpose(x, (0, 2, 1)).astype(jnp.bfloat16)     # (B, T, n_mels)
    p1, t1 = _im2col_nwc(x_nwc, kernel_size=3, stride=1, padding=1)
    h = linear(p1.reshape(B * t1, -1), params["conv1_w"], params["conv1_b"],
               activation="gelu")
    h = h.reshape(B, t1, n_state)                                # already NWC

    # --- conv2 (k=3, s=2, p=1) + GELU + positional add, all in one epilogue ---
    p2, t2 = _im2col_nwc(h, kernel_size=3, stride=2, padding=1)  # (B, t2, 3*n_state)
    h = linear(p2, params["conv2_w"], params["conv2_b"],
               activation="gelu", pos=pos)        # == permute(0,2,1) + pos add
    seq = t2

    for blk in params["blocks"]:
        # self-attention sub-block: x = x + attn_out_proj(attn(attn_ln(x)))
        x2 = h.reshape(B * seq, n_state)
        qkv = linear(x2, blk["wqkv"], blk["bqkv"],
                     ln=(blk["attn_ln_g"], blk["attn_ln_b"]))     # LN fused in
        attn = flash_attention(qkv.reshape(B, seq, 3 * n_state), n_head)
        x2 = linear(attn.reshape(B * seq, n_state), blk["wo"], blk["bo"],
                    residual=x2)                                  # fused residual

        # mlp sub-block: x = x + w2(gelu(w1(mlp_ln(x))))
        y = linear(x2, blk["w1"], blk["b1"], activation="gelu",
                   ln=(blk["mlp_ln_g"], blk["mlp_ln_b"]))         # LN fused in
        x2 = linear(y, blk["w2"], blk["b2"], residual=x2)         # fused residual

        h = x2.reshape(B, seq, n_state)

    # --- ln_post ---
    out = layernorm(h.reshape(B * seq, n_state),
                    params["ln_post_g"], params["ln_post_b"],
                    out_dtype=jnp.float32)
    return out.reshape(B, seq, n_state)


# ----------------------------------------------------------------------------
# Main
# ----------------------------------------------------------------------------
if __name__ == "__main__":
    B, n_mels, T = 2, 8, 16          # mel spectrogram: (batch, n_mels, n_frames)
    n_state, n_head, n_layer = 32, 4, 2
    n_ctx = 12                       # > T//2 so the [-n_audio_ctx:] slice is exercised

    key = jax.random.PRNGKey(0)
    kx, kp = jax.random.split(key)
    params = init_params(kp, n_mels, n_state, n_layer)
    positional_embedding = sinusoids(n_ctx, n_state)   # the registered buffer
    x = jax.random.normal(kx, (B, n_mels, T), dtype=jnp.float32)

    prepared = prepare_params(params)
    fwd = jax.jit(functools.partial(audio_encoder_forward, n_head=n_head))
    out = fwd(prepared, positional_embedding, x)
    out = jax.block_until_ready(out)

    assert out.shape == (B, T // 2, n_state), out.shape
    assert bool(jnp.all(jnp.isfinite(out)))
    print("KERNEL_OK")
</pallas_src>

<mosaic_0001>
module attributes {stable_mosaic.version = 11 : i64} {
  func.func @_linear_kernel(%arg0: i32, %arg1: i32, %arg2: i32, %arg3: memref<1x32x24xbf16, #tpu.memory_space<vmem>>, %arg4: memref<24x32xbf16, #tpu.memory_space<vmem>>, %arg5: memref<1x32xf32, #tpu.memory_space<vmem>>, %arg6: memref<1x32x32xbf16, #tpu.memory_space<vmem>>) attributes {dimension_semantics = [#tpu.dimension_semantics<parallel>, #tpu.dimension_semantics<parallel>, #tpu.dimension_semantics<parallel>], iteration_bounds = array<i64: 1, 1, 1>, scalar_prefetch = 0 : i64, scratch_operands = 0 : i64, tpu.core_type = #tpu.core_type<tc>, window_params = [{transform_indices = @transform_0, window_bounds = array<i64: 1, 32, 24>}, {transform_indices = @transform_1, window_bounds = array<i64: 24, 32>}, {transform_indices = @transform_2, window_bounds = array<i64: 1, 32>}, {transform_indices = @transform_3, window_bounds = array<i64: 1, 32, 32>}]} {
    %c0 = arith.constant 0 : index
    %c0_0 = arith.constant 0 : index
    %c0_1 = arith.constant 0 : index
    %0 = vector.load %arg3[%c0, %c0_0, %c0_1] : memref<1x32x24xbf16, #tpu.memory_space<vmem>>, vector<1x32x24xbf16>
    %1 = vector.shape_cast %0 : vector<1x32x24xbf16> to vector<32x24xbf16>
    %c0_2 = arith.constant 0 : index
    %c0_3 = arith.constant 0 : index
    %2 = vector.load %arg4[%c0_2, %c0_3] : memref<24x32xbf16, #tpu.memory_space<vmem>>, vector<24x32xbf16>
    %cst = arith.constant dense<0.000000e+00> : vector<32x32xf32>
    %3 = tpu.matmul %1, %2, %cst {dimension_numbers = #tpu.dot_dimension_numbers<[1], [0], [0], [1], [0, 0, 1, 1], [], []>} : vector<32x24xbf16>, vector<24x32xbf16>, vector<32x32xf32> -> vector<32x32xf32>
    %c0_4 = arith.constant 0 : index
    %c0_5 = arith.constant 0 : index
    %4 = vector.load %arg5[%c0_4, %c0_5] : memref<1x32xf32, #tpu.memory_space<vmem>>, vector<1x32xf32>
    %5 = vector.broadcast %4 : vector<1x32xf32> to vector<32x32xf32>
    %6 = arith.addf %3, %5 : vector<32x32xf32>
    %cst_6 = arith.constant 5.000000e-01 : f32
    %7 = vector.broadcast %cst_6 : f32 to vector<32x32xf32>
    %8 = arith.mulf %7, %6 : vector<32x32xf32>
    %cst_7 = arith.constant 4.471500e-02 : f32
    %9 = vector.broadcast %cst_7 : f32 to vector<32x32xf32>
    %10 = arith.mulf %9, %6 : vector<32x32xf32>
    %11 = arith.mulf %10, %6 : vector<32x32xf32>
    %12 = arith.mulf %11, %6 : vector<32x32xf32>
    %13 = arith.addf %6, %12 : vector<32x32xf32>
    %cst_8 = arith.constant 0.797884583 : f32
    %14 = vector.broadcast %cst_8 : f32 to vector<32x32xf32>
    %15 = arith.mulf %14, %13 : vector<32x32xf32>
    %16 = math.tanh %15 : vector<32x32xf32>
    %cst_9 = arith.constant 1.000000e+00 : f32
    %17 = vector.broadcast %cst_9 : f32 to vector<32x32xf32>
    %18 = arith.addf %17, %16 : vector<32x32xf32>
    %19 = arith.mulf %8, %18 : vector<32x32xf32>
    %20 = arith.truncf %19 : vector<32x32xf32> to vector<32x32xbf16>
    %c0_10 = arith.constant 0 : index
    %c0_11 = arith.constant 0 : index
    %c0_12 = arith.constant 0 : index
    %21 = vector.load %arg6[%c0_10, %c0_11, %c0_12] : memref<1x32x32xbf16, #tpu.memory_space<vmem>>, vector<1x32x32xbf16>
    %22 = vector.shape_cast %21 : vector<1x32x32xbf16> to vector<32x32xbf16>
    %23 = vector.shape_cast %20 : vector<32x32xbf16> to vector<1x32x32xbf16>
    tpu.vector_store %arg6[%c0_10, %c0_11, %c0_12], %23 {strides = array<i32>} : memref<1x32x32xbf16, #tpu.memory_space<vmem>>, vector<1x32x32xbf16>,
    return
  }
  func.func @transform_0(%arg0: i32, %arg1: i32, %arg2: i32) -> (i32, i32, i32) {
    %c0_i32 = arith.constant 0 : i32
    %c0_i32_0 = arith.constant 0 : i32
    return %arg0, %arg1, %c0_i32 : i32, i32, i32
  }
  func.func @transform_1(%arg0: i32, %arg1: i32, %arg2: i32) -> (i32, i32) {
    %c0_i32 = arith.constant 0 : i32
    %c0_i32_0 = arith.constant 0 : i32
    return %c0_i32, %arg2 : i32, i32
  }
  func.func @transform_2(%arg0: i32, %arg1: i32, %arg2: i32) -> (i32, i32) {
    %c0_i32 = arith.constant 0 : i32
    %c0_i32_0 = arith.constant 0 : i32
    return %c0_i32, %arg2 : i32, i32
  }
  func.func @transform_3(%arg0: i32, %arg1: i32, %arg2: i32) -> (i32, i32, i32) {
    %c0_i32 = arith.constant 0 : i32
    return %arg0, %arg1, %arg2 : i32, i32, i32
  }
}

module attributes {stable_mosaic.version = 11 : i64} {
  func.func @_linear_kernel(%arg0: i32, %arg1: i32, %arg2: i32, %arg3: memref<1x16x32xbf16, #tpu.memory_space<vmem>>, %arg4: memref<32x96xbf16, #tpu.memory_space<vmem>>, %arg5: memref<1x96xf32, #tpu.memory_space<vmem>>, %arg6: memref<1x32xf32, #tpu.memory_space<vmem>>, %arg7: memref<1x32xf32, #tpu.memory_space<vmem>>, %arg8: memref<1x16x96xbf16, #tpu.memory_space<vmem>>) attributes {dimension_semantics = [#tpu.dimension_semantics<parallel>, #tpu.dimension_semantics<parallel>, #tpu.dimension_semantics<parallel>], iteration_bounds = array<i64: 1, 1, 1>, scalar_prefetch = 0 : i64, scratch_operands = 0 : i64, tpu.core_type = #tpu.core_type<tc>, window_params = [{transform_indices = @transform_0, window_bounds = array<i64: 1, 16, 32>}, {transform_indices = @transform_1, window_bounds = array<i64: 32, 96>}, {transform_indices = @transform_2, window_bounds = array<i64: 1, 96>}, {pipeline_mode = #tpu.pipeline_mode<synchronous>, transform_indices = @transform_3, window_bounds = array<i64: 1, 32>}, {pipeline_mode = #tpu.pipeline_mode<synchronous>, transform_indices = @transform_4, window_bounds = array<i64: 1, 32>}, {transform_indices = @transform_5, window_bounds = array<i64: 1, 16, 96>}]} {
    %c0 = arith.constant 0 : index
    %c0_0 = arith.constant 0 : index
    %c0_1 = arith.constant 0 : index
    %0 = vector.load %arg3[%c0, %c0_0, %c0_1] : memref<1x16x32xbf16, #tpu.memory_space<vmem>>, vector<1x16x32xbf16>
    %1 = vector.shape_cast %0 : vector<1x16x32xbf16> to vector<16x32xbf16>
    %2 = arith.extf %1 : vector<16x32xbf16> to vector<16x32xf32>
    %cst = arith.constant dense<0.000000e+00> : vector<16xf32>
    %3 = vector.multi_reduction <add>, %2, %cst [1] : vector<16x32xf32> to vector<16xf32>
    %4 = vector.shape_cast %3 : vector<16xf32> to vector<16x1xf32>
    %cst_2 = arith.constant 3.200000e+01 : f32
    %5 = vector.broadcast %cst_2 : f32 to vector<16x1xf32>
    %6 = arith.divf %4, %5 : vector<16x1xf32>
    %7 = vector.broadcast %6 : vector<16x1xf32> to vector<16x32xf32>
    %8 = arith.subf %2, %7 : vector<16x32xf32>
    %9 = arith.mulf %8, %8 : vector<16x32xf32>
    %cst_3 = arith.constant dense<0.000000e+00> : vector<16xf32>
    %10 = vector.multi_reduction <add>, %9, %cst_3 [1] : vector<16x32xf32> to vector<16xf32>
    %11 = vector.shape_cast %10 : vector<16xf32> to vector<16x1xf32>
    %cst_4 = arith.constant 3.200000e+01 : f32
    %12 = vector.broadcast %cst_4 : f32 to vector<16x1xf32>
    %13 = arith.divf %11, %12 : vector<16x1xf32>
    %cst_5 = arith.constant 9.99999974E-6 : f32
    %14 = vector.broadcast %cst_5 : f32 to vector<16x1xf32>
    %15 = arith.addf %13, %14 : vector<16x1xf32>
    %16 = math.rsqrt %15 : vector<16x1xf32>
    %17 = vector.broadcast %16 : vector<16x1xf32> to vector<16x32xf32>
    %18 = arith.mulf %8, %17 : vector<16x32xf32>
    %c0_6 = arith.constant 0 : index
    %c0_7 = arith.constant 0 : index
    %19 = vector.load %arg6[%c0_6, %c0_7] : memref<1x32xf32, #tpu.memory_space<vmem>>, vector<1x32xf32>
    %20 = vector.broadcast %19 : vector<1x32xf32> to vector<16x32xf32>
    %21 = arith.mulf %18, %20 : vector<16x32xf32>
    %c0_8 = arith.constant 0 : index
    %c0_9 = arith.constant 0 : index
    %22 = vector.load %arg7[%c0_8, %c0_9] : memref<1x32xf32, #tpu.memory_space<vmem>>, vector<1x32xf32>
    %23 = vector.broadcast %22 : vector<1x32xf32> to vector<16x32xf32>
    %24 = arith.addf %21, %23 : vector<16x32xf32>
    %25 = arith.truncf %24 : vector<16x32xf32> to vector<16x32xbf16>
    %c0_10 = arith.constant 0 : index
    %c0_11 = arith.constant 0 : index
    %26 = vector.load %arg4[%c0_10, %c0_11] : memref<32x96xbf16, #tpu.memory_space<vmem>>, vector<32x96xbf16>
    %cst_12 = arith.constant dense<0.000000e+00> : vector<16x96xf32>
    %27 = tpu.matmul %25, %26, %cst_12 {dimension_numbers = #tpu.dot_dimension_numbers<[1], [0], [0], [1], [0, 0, 1, 1], [], []>} : vector<16x32xbf16>, vector<32x96xbf16>, vector<16x96xf32> -> vector<16x96xf32>
    %c0_13 = arith.constant 0 : index
    %c0_14 = arith.constant 0 : index
    %28 = vector.load %arg5[%c0_13, %c0_14] : memref<1x96xf32, #tpu.memory_space<vmem>>, vector<1x96xf32>
    %29 = vector.broadcast %28 : vector<1x96xf32> to vector<16x96xf32>
    %30 = arith.addf %27, %29 : vector<16x96xf32>
    %31 = arith.truncf %30 : vector<16x96xf32> to vector<16x96xbf16>
    %c0_15 = arith.constant 0 : index
    %c0_16 = arith.constant 0 : index
    %c0_17 = arith.constant 0 : index
    %32 = vector.load %arg8[%c0_15, %c0_16, %c0_17] : memref<1x16x96xbf16, #tpu.memory_space<vmem>>, vector<1x16x96xbf16>
    %33 = vector.shape_cast %32 : vector<1x16x96xbf16> to vector<16x96xbf16>
    %34 = vector.shape_cast %31 : vector<16x96xbf16> to vector<1x16x96xbf16>
    tpu.vector_store %arg8[%c0_15, %c0_16, %c0_17], %34 {strides = array<i32>} : memref<1x16x96xbf16, #tpu.memory_space<vmem>>, vector<1x16x96xbf16>,
    return
  }
  func.func @transform_0(%arg0: i32, %arg1: i32, %arg2: i32) -> (i32, i32, i32) {
    %c0_i32 = arith.constant 0 : i32
    %c0_i32_0 = arith.constant 0 : i32
    return %arg0, %arg1, %c0_i32 : i32, i32, i32
  }
  func.func @transform_1(%arg0: i32, %arg1: i32, %arg2: i32) -> (i32, i32) {
    %c0_i32 = arith.constant 0 : i32
    %c0_i32_0 = arith.constant 0 : i32
    return %c0_i32, %arg2 : i32, i32
  }
  func.func @transform_2(%arg0: i32, %arg1: i32, %arg2: i32) -> (i32, i32) {
    %c0_i32 = arith.constant 0 : i32
    %c0_i32_0 = arith.constant 0 : i32
    return %c0_i32, %arg2 : i32, i32
  }
  func.func @transform_3(%arg0: i32, %arg1: i32, %arg2: i32) -> (i32, i32) {
    %c0_i32 = arith.constant 0 : i32
    %c0_i32_0 = arith.constant 0 : i32
    %c0_i32_1 = arith.constant 0 : i32
    return %c0_i32, %c0_i32_0 : i32, i32
  }
  func.func @transform_4(%arg0: i32, %arg1: i32, %arg2: i32) -> (i32, i32) {
    %c0_i32 = arith.constant 0 : i32
    %c0_i32_0 = arith.constant 0 : i32
    %c0_i32_1 = arith.constant 0 : i32
    return %c0_i32, %c0_i32_0 : i32, i32
  }
  func.func @transform_5(%arg0: i32, %arg1: i32, %arg2: i32) -> (i32, i32, i32) {
    %c0_i32 = arith.constant 0 : i32
    return %arg0, %arg1, %arg2 : i32, i32, i32
  }
}

module attributes {stable_mosaic.version = 11 : i64} {
  func.func @_linear_kernel(%arg0: i32, %arg1: i32, %arg2: i32, %arg3: memref<1x8x96xbf16, #tpu.memory_space<vmem>>, %arg4: memref<96x32xbf16, #tpu.memory_space<vmem>>, %arg5: memref<1x32xf32, #tpu.memory_space<vmem>>, %arg6: memref<8x32xbf16, #tpu.memory_space<vmem>>, %arg7: memref<1x8x32xbf16, #tpu.memory_space<vmem>>) attributes {dimension_semantics = [#tpu.dimension_semantics<parallel>, #tpu.dimension_semantics<parallel>, #tpu.dimension_semantics<parallel>], iteration_bounds = array<i64: 2, 1, 1>, scalar_prefetch = 0 : i64, scratch_operands = 0 : i64, tpu.core_type = #tpu.core_type<tc>, window_params = [{transform_indices = @transform_0, window_bounds = array<i64: 1, 8, 96>}, {transform_indices = @transform_1, window_bounds = array<i64: 96, 32>}, {transform_indices = @transform_2, window_bounds = array<i64: 1, 32>}, {transform_indices = @transform_3, window_bounds = array<i64: 8, 32>}, {transform_indices = @transform_4, window_bounds = array<i64: 1, 8, 32>}]} {
    %c0 = arith.constant 0 : index
    %c0_0 = arith.constant 0 : index
    %c0_1 = arith.constant 0 : index
    %0 = vector.load %arg3[%c0, %c0_0, %c0_1] : memref<1x8x96xbf16, #tpu.memory_space<vmem>>, vector<1x8x96xbf16>
    %1 = vector.shape_cast %0 : vector<1x8x96xbf16> to vector<8x96xbf16>
    %c0_2 = arith.constant 0 : index
    %c0_3 = arith.constant 0 : index
    %2 = vector.load %arg4[%c0_2, %c0_3] : memref<96x32xbf16, #tpu.memory_space<vmem>>, vector<96x32xbf16>
    %cst = arith.constant dense<0.000000e+00> : vector<8x32xf32>
    %3 = tpu.matmul %1, %2, %cst {dimension_numbers = #tpu.dot_dimension_numbers<[1], [0], [0], [1], [0, 0, 1, 1], [], []>} : vector<8x96xbf16>, vector<96x32xbf16>, vector<8x32xf32> -> vector<8x32xf32>
    %c0_4 = arith.constant 0 : index
    %c0_5 = arith.constant 0 : index
    %4 = vector.load %arg5[%c0_4, %c0_5] : memref<1x32xf32, #tpu.memory_space<vmem>>, vector<1x32xf32>
    %5 = vector.broadcast %4 : vector<1x32xf32> to vector<8x32xf32>
    %6 = arith.addf %3, %5 : vector<8x32xf32>
    %cst_6 = arith.constant 5.000000e-01 : f32
    %7 = vector.broadcast %cst_6 : f32 to vector<8x32xf32>
    %8 = arith.mulf %7, %6 : vector<8x32xf32>
    %cst_7 = arith.constant 4.471500e-02 : f32
    %9 = vector.broadcast %cst_7 : f32 to vector<8x32xf32>
    %10 = arith.mulf %9, %6 : vector<8x32xf32>
    %11 = arith.mulf %10, %6 : vector<8x32xf32>
    %12 = arith.mulf %11, %6 : vector<8x32xf32>
    %13 = arith.addf %6, %12 : vector<8x32xf32>
    %cst_8 = arith.constant 0.797884583 : f32
    %14 = vector.broadcast %cst_8 : f32 to vector<8x32xf32>
    %15 = arith.mulf %14, %13 : vector<8x32xf32>
    %16 = math.tanh %15 : vector<8x32xf32>
    %cst_9 = arith.constant 1.000000e+00 : f32
    %17 = vector.broadcast %cst_9 : f32 to vector<8x32xf32>
    %18 = arith.addf %17, %16 : vector<8x32xf32>
    %19 = arith.mulf %8, %18 : vector<8x32xf32>
    %c0_10 = arith.constant 0 : index
    %c0_11 = arith.constant 0 : index
    %20 = vector.load %arg6[%c0_10, %c0_11] : memref<8x32xbf16, #tpu.memory_space<vmem>>, vector<8x32xbf16>
    %21 = arith.extf %20 : vector<8x32xbf16> to vector<8x32xf32>
    %22 = arith.addf %19, %21 : vector<8x32xf32>
    %23 = arith.truncf %22 : vector<8x32xf32> to vector<8x32xbf16>
    %c0_12 = arith.constant 0 : index
    %c0_13 = arith.constant 0 : index
    %c0_14 = arith.constant 0 : index
    %24 = vector.load %arg7[%c0_12, %c0_13, %c0_14] : memref<1x8x32xbf16, #tpu.memory_space<vmem>>, vector<1x8x32xbf16>
    %25 = vector.shape_cast %24 : vector<1x8x32xbf16> to vector<8x32xbf16>
    %26 = vector.shape_cast %23 : vector<8x32xbf16> to vector<1x8x32xbf16>
    tpu.vector_store %arg7[%c0_12, %c0_13, %c0_14], %26 {strides = array<i32>} : memref<1x8x32xbf16, #tpu.memory_space<vmem>>, vector<1x8x32xbf16>,
    return
  }
  func.func @transform_0(%arg0: i32, %arg1: i32, %arg2: i32) -> (i32, i32, i32) {
    %c0_i32 = arith.constant 0 : i32
    %c0_i32_0 = arith.constant 0 : i32
    return %arg0, %arg1, %c0_i32 : i32, i32, i32
  }
  func.func @transform_1(%arg0: i32, %arg1: i32, %arg2: i32) -> (i32, i32) {
    %c0_i32 = arith.constant 0 : i32
    %c0_i32_0 = arith.constant 0 : i32
    return %c0_i32, %arg2 : i32, i32
  }
  func.func @transform_2(%arg0: i32, %arg1: i32, %arg2: i32) -> (i32, i32) {
    %c0_i32 = arith.constant 0 : i32
    %c0_i32_0 = arith.constant 0 : i32
    return %c0_i32, %arg2 : i32, i32
  }
  func.func @transform_3(%arg0: i32, %arg1: i32, %arg2: i32) -> (i32, i32) {
    %c0_i32 = arith.constant 0 : i32
    return %arg1, %arg2 : i32, i32
  }
  func.func @transform_4(%arg0: i32, %arg1: i32, %arg2: i32) -> (i32, i32, i32) {
    %c0_i32 = arith.constant 0 : i32
    return %arg0, %arg1, %arg2 : i32, i32, i32
  }
}

module attributes {stable_mosaic.version = 11 : i64} {
  func.func @_flash_attn_kernel(%arg0: i32, %arg1: i32, %arg2: i32, %arg3: memref<1x8x32xbf16, #tpu.memory_space<vmem>>, %arg4: memref<1x8x32xbf16, #tpu.memory_space<vmem>>, %arg5: memref<1x8x32xbf16, #tpu.memory_space<vmem>>, %arg6: memref<1x8x32xbf16, #tpu.memory_space<vmem>>, %arg7: memref<4x8x8xbf16, #tpu.memory_space<vmem>>, %arg8: memref<4x8x1xf32, #tpu.memory_space<vmem>>, %arg9: memref<4x8x1xf32, #tpu.memory_space<vmem>>, %arg10: memref<4x8x8xf32, #tpu.memory_space<vmem>>) attributes {dimension_semantics = [#tpu.dimension_semantics<parallel>, #tpu.dimension_semantics<parallel>, #tpu.dimension_semantics<arbitrary>], iteration_bounds = array<i64: 2, 1, 1>, scalar_prefetch = 0 : i64, scratch_operands = 4 : i64, tpu.core_type = #tpu.core_type<tc>, window_params = [{transform_indices = @transform_0, window_bounds = array<i64: 1, 8, 32>}, {transform_indices = @transform_1, window_bounds = array<i64: 1, 8, 32>}, {transform_indices = @transform_2, window_bounds = array<i64: 1, 8, 32>}, {transform_indices = @transform_3, window_bounds = array<i64: 1, 8, 32>}]} {
    %c0_i32 = arith.constant 0 : i32
    %0 = arith.cmpi eq, %arg2, %c0_i32 : i32
    %1 = arith.extui %0 : i1 to i32
    %c0_i32_0 = arith.constant 0 : i32
    %2 = arith.cmpi ne, %1, %c0_i32_0 : i32
    scf.if %2 {
      %cst_32 = arith.constant 0xFF800000 : f32
      %39 = vector.broadcast %cst_32 : f32 to vector<4x8x1xf32>
      %c0_33 = arith.constant 0 : index
      %c0_34 = arith.constant 0 : index
      %c0_35 = arith.constant 0 : index
      %40 = vector.load %arg8[%c0_33, %c0_34, %c0_35] : memref<4x8x1xf32, #tpu.memory_space<vmem>>, vector<4x8x1xf32>
      tpu.vector_store %arg8[%c0_33, %c0_34, %c0_35], %39 {strides = array<i32>} : memref<4x8x1xf32, #tpu.memory_space<vmem>>, vector<4x8x1xf32>,
      %cst_36 = arith.constant 0.000000e+00 : f32
      %41 = vector.broadcast %cst_36 : f32 to vector<4x8x1xf32>
      %c0_37 = arith.constant 0 : index
      %c0_38 = arith.constant 0 : index
      %c0_39 = arith.constant 0 : index
      %42 = vector.load %arg9[%c0_37, %c0_38, %c0_39] : memref<4x8x1xf32, #tpu.memory_space<vmem>>, vector<4x8x1xf32>
      tpu.vector_store %arg9[%c0_37, %c0_38, %c0_39], %41 {strides = array<i32>} : memref<4x8x1xf32, #tpu.memory_space<vmem>>, vector<4x8x1xf32>,
      %cst_40 = arith.constant 0.000000e+00 : f32
      %43 = vector.broadcast %cst_40 : f32 to vector<4x8x8xf32>
      %c0_41 = arith.constant 0 : index
      %c0_42 = arith.constant 0 : index
      %c0_43 = arith.constant 0 : index
      %44 = vector.load %arg10[%c0_41, %c0_42, %c0_43] : memref<4x8x8xf32, #tpu.memory_space<vmem>>, vector<4x8x8xf32>
      tpu.vector_store %arg10[%c0_41, %c0_42, %c0_43], %43 {strides = array<i32>} : memref<4x8x8xf32, #tpu.memory_space<vmem>>, vector<4x8x8xf32>,
      %c0_44 = arith.constant 0 : index
      %c0_45 = arith.constant 0 : index
      %c0_46 = arith.constant 0 : index
      %45 = vector.load %arg3[%c0_44, %c0_45, %c0_46] : memref<1x8x32xbf16, #tpu.memory_space<vmem>>, vector<1x8x32xbf16>
      %46 = vector.shape_cast %45 : vector<1x8x32xbf16> to vector<8x32xbf16>
      %47 = vector.shape_cast %46 : vector<8x32xbf16> to vector<8x4x8xbf16>
      %48 = tpu.transpose %47, [1, 0, 2] : vector<8x4x8xbf16> -> vector<4x8x8xbf16>
      %49 = arith.extf %48 : vector<4x8x8xbf16> to vector<4x8x8xf32>
      %cst_47 = arith.constant 0.353553385 : f32
      %50 = vector.broadcast %cst_47 : f32 to vector<4x8x8xf32>
      %51 = arith.mulf %49, %50 : vector<4x8x8xf32>
      %52 = arith.truncf %51 : vector<4x8x8xf32> to vector<4x8x8xbf16>
      %c0_48 = arith.constant 0 : index
      %c0_49 = arith.constant 0 : index
      %c0_50 = arith.constant 0 : index
      %53 = vector.load %arg7[%c0_48, %c0_49, %c0_50] : memref<4x8x8xbf16, #tpu.memory_space<vmem>>, vector<4x8x8xbf16>
      tpu.vector_store %arg7[%c0_48, %c0_49, %c0_50], %52 {strides = array<i32>} : memref<4x8x8xbf16, #tpu.memory_space<vmem>>, vector<4x8x8xbf16>,
    } else {
    }
    %c0 = arith.constant 0 : index
    %c0_1 = arith.constant 0 : index
    %c0_2 = arith.constant 0 : index
    %3 = vector.load %arg4[%c0, %c0_1, %c0_2] : memref<1x8x32xbf16, #tpu.memory_space<vmem>>, vector<1x8x32xbf16>
    %4 = vector.shape_cast %3 : vector<1x8x32xbf16> to vector<8x32xbf16>
    %5 = vector.shape_cast %4 : vector<8x32xbf16> to vector<8x4x8xbf16>
    %6 = tpu.transpose %5, [1, 0, 2] : vector<8x4x8xbf16> -> vector<4x8x8xbf16>
    %c0_3 = arith.constant 0 : index
    %c0_4 = arith.constant 0 : index
    %c0_5 = arith.constant 0 : index
    %7 = vector.load %arg5[%c0_3, %c0_4, %c0_5] : memref<1x8x32xbf16, #tpu.memory_space<vmem>>, vector<1x8x32xbf16>
    %8 = vector.shape_cast %7 : vector<1x8x32xbf16> to vector<8x32xbf16>
    %9 = vector.shape_cast %8 : vector<8x32xbf16> to vector<8x4x8xbf16>
    %10 = tpu.transpose %9, [1, 0, 2] : vector<8x4x8xbf16> -> vector<4x8x8xbf16>
    %c0_6 = arith.constant 0 : index
    %c0_7 = arith.constant 0 : index
    %c0_8 = arith.constant 0 : index
    %11 = vector.load %arg7[%c0_6, %c0_7, %c0_8] : memref<4x8x8xbf16, #tpu.memory_space<vmem>>, vector<4x8x8xbf16>
    "tpu.trace_start"() <{level = 10 : i32, message = "hqd,hkd->hqk"}> : () -> ()
    %cst = arith.constant dense<0.000000e+00> : vector<4x8x8xf32>
    %12 = tpu.matmul %11, %6, %cst {dimension_numbers = #tpu.dot_dimension_numbers<[2], [2], [1], [1], [0, 0, 0, 1, 1, 1], [0], [0]>} : vector<4x8x8xbf16>, vector<4x8x8xbf16>, vector<4x8x8xf32> -> vector<4x8x8xf32>
    "tpu.trace_stop"() : () -> ()
    %c0_9 = arith.constant 0 : index
    %c0_10 = arith.constant 0 : index
    %c0_11 = arith.constant 0 : index
    %13 = vector.load %arg8[%c0_9, %c0_10, %c0_11] : memref<4x8x1xf32, #tpu.memory_space<vmem>>, vector<4x8x1xf32>
    %cst_12 = arith.constant dense<0xFF800000> : vector<4x8xf32>
    %14 = vector.multi_reduction <maximumf>, %12, %cst_12 [2] : vector<4x8x8xf32> to vector<4x8xf32>
    %15 = vector.shape_cast %14 : vector<4x8xf32> to vector<4x8x1xf32>
    %16 = arith.maximumf %13, %15 : vector<4x8x1xf32>
    %17 = arith.subf %13, %16 : vector<4x8x1xf32>
    %18 = math.exp %17 : vector<4x8x1xf32>
    %19 = vector.broadcast %16 : vector<4x8x1xf32> to vector<4x8x8xf32>
    %20 = arith.subf %12, %19 : vector<4x8x8xf32>
    %21 = math.exp %20 : vector<4x8x8xf32>
    %c0_13 = arith.constant 0 : index
    %c0_14 = arith.constant 0 : index
    %c0_15 = arith.constant 0 : index
    %22 = vector.load %arg9[%c0_13, %c0_14, %c0_15] : memref<4x8x1xf32, #tpu.memory_space<vmem>>, vector<4x8x1xf32>
    %23 = arith.mulf %18, %22 : vector<4x8x1xf32>
    %cst_16 = arith.constant dense<0.000000e+00> : vector<4x8xf32>
    %24 = vector.multi_reduction <add>, %21, %cst_16 [2] : vector<4x8x8xf32> to vector<4x8xf32>
    %25 = vector.shape_cast %24 : vector<4x8xf32> to vector<4x8x1xf32>
    %26 = arith.addf %23, %25 : vector<4x8x1xf32>
    %c0_17 = arith.constant 0 : index
    %c0_18 = arith.constant 0 : index
    %c0_19 = arith.constant 0 : index
    %27 = vector.load %arg9[%c0_17, %c0_18, %c0_19] : memref<4x8x1xf32, #tpu.memory_space<vmem>>, vector<4x8x1xf32>
    tpu.vector_store %arg9[%c0_17, %c0_18, %c0_19], %26 {strides = array<i32>} : memref<4x8x1xf32, #tpu.memory_space<vmem>>, vector<4x8x1xf32>,
    %c0_20 = arith.constant 0 : index
    %c0_21 = arith.constant 0 : index
    %c0_22 = arith.constant 0 : index
    %28 = vector.load %arg10[%c0_20, %c0_21, %c0_22] : memref<4x8x8xf32, #tpu.memory_space<vmem>>, vector<4x8x8xf32>
    %29 = vector.broadcast %18 : vector<4x8x1xf32> to vector<4x8x8xf32>
    %30 = arith.mulf %29, %28 : vector<4x8x8xf32>
    %31 = arith.truncf %21 : vector<4x8x8xf32> to vector<4x8x8xbf16>
    "tpu.trace_start"() <{level = 10 : i32, message = "hqk,hkd->hqd"}> : () -> ()
    %cst_23 = arith.constant dense<0.000000e+00> : vector<4x8x8xf32>
    %32 = tpu.matmul %31, %10, %cst_23 {dimension_numbers = #tpu.dot_dimension_numbers<[2], [1], [1], [2], [0, 0, 0, 1, 1, 2], [0], [0]>} : vector<4x8x8xbf16>, vector<4x8x8xbf16>, vector<4x8x8xf32> -> vector<4x8x8xf32>
    "tpu.trace_stop"() : () -> ()
    %33 = arith.addf %30, %32 : vector<4x8x8xf32>
    %c0_24 = arith.constant 0 : index
    %c0_25 = arith.constant 0 : index
    %c0_26 = arith.constant 0 : index
    %34 = vector.load %arg10[%c0_24, %c0_25, %c0_26] : memref<4x8x8xf32, #tpu.memory_space<vmem>>, vector<4x8x8xf32>
    tpu.vector_store %arg10[%c0_24, %c0_25, %c0_26], %33 {strides = array<i32>} : memref<4x8x8xf32, #tpu.memory_space<vmem>>, vector<4x8x8xf32>,
    %c0_27 = arith.constant 0 : index
    %c0_28 = arith.constant 0 : index
    %c0_29 = arith.constant 0 : index
    %35 = vector.load %arg8[%c0_27, %c0_28, %c0_29] : memref<4x8x1xf32, #tpu.memory_space<vmem>>, vector<4x8x1xf32>
    tpu.vector_store %arg8[%c0_27, %c0_28, %c0_29], %16 {strides = array<i32>} : memref<4x8x1xf32, #tpu.memory_space<vmem>>, vector<4x8x1xf32>,
    %c0_i32_30 = arith.constant 0 : i32
    %36 = arith.cmpi eq, %arg2, %c0_i32_30 : i32
    %37 = arith.extui %36 : i1 to i32
    %c0_i32_31 = arith.constant 0 : i32
    %38 = arith.cmpi ne, %37, %c0_i32_31 : i32
    scf.if %38 {
      %c0_32 = arith.constant 0 : index
      %c0_33 = arith.constant 0 : index
      %c0_34 = arith.constant 0 : index
      %39 = vector.load %arg10[%c0_32, %c0_33, %c0_34] : memref<4x8x8xf32, #tpu.memory_space<vmem>>, vector<4x8x8xf32>
      %c0_35 = arith.constant 0 : index
      %c0_36 = arith.constant 0 : index
      %c0_37 = arith.constant 0 : index
      %40 = vector.load %arg9[%c0_35, %c0_36, %c0_37] : memref<4x8x1xf32, #tpu.memory_space<vmem>>, vector<4x8x1xf32>
      %41 = tpu.reciprocal %40 {approx = true} : vector<4x8x1xf32> -> vector<4x8x1xf32>
      %42 = vector.broadcast %41 : vector<4x8x1xf32> to vector<4x8x8xf32>
      %43 = arith.mulf %39, %42 : vector<4x8x8xf32>
      %44 = tpu.transpose %43, [1, 0, 2] : vector<4x8x8xf32> -> vector<8x4x8xf32>
      %45 = vector.shape_cast %44 : vector<8x4x8xf32> to vector<8x32xf32>
      %46 = arith.truncf %45 : vector<8x32xf32> to vector<8x32xbf16>
      %c0_38 = arith.constant 0 : index
      %c0_39 = arith.constant 0 : index
      %c0_40 = arith.constant 0 : index
      %47 = vector.load %arg6[%c0_38, %c0_39, %c0_40] : memref<1x8x32xbf16, #tpu.memory_space<vmem>>, vector<1x8x32xbf16>
      %48 = vector.shape_cast %47 : vector<1x8x32xbf16> to vector<8x32xbf16>
      %49 = vector.shape_cast %46 : vector<8x32xbf16> to vector<1x8x32xbf16>
      tpu.vector_store %arg6[%c0_38, %c0_39, %c0_40], %49 {strides = array<i32>} : memref<1x8x32xbf16, #tpu.memory_space<vmem>>, vector<1x8x32xbf16>,
    } else {
    }
    return
  }
  func.func @transform_0(%arg0: i32, %arg1: i32, %arg2: i32) -> (i32, i32, i32) {
    %c0_i32 = arith.constant 0 : i32
    %c0_i32_0 = arith.constant 0 : i32
    return %arg0, %arg1, %c0_i32 : i32, i32, i32
  }
  func.func @transform_1(%arg0: i32, %arg1: i32, %arg2: i32) -> (i32, i32, i32) {
    %c0_i32 = arith.constant 0 : i32
    %c0_i32_0 = arith.constant 0 : i32
    return %arg0, %arg2, %c0_i32 : i32, i32, i32
  }
  func.func @transform_2(%arg0: i32, %arg1: i32, %arg2: i32) -> (i32, i32, i32) {
    %c0_i32 = arith.constant 0 : i32
    %c0_i32_0 = arith.constant 0 : i32
    return %arg0, %arg2, %c0_i32 : i32, i32, i32
  }
  func.func @transform_3(%arg0: i32, %arg1: i32, %arg2: i32) -> (i32, i32, i32) {
    %c0_i32 = arith.constant 0 : i32
    %c0_i32_0 = arith.constant 0 : i32
    return %arg0, %arg1, %c0_i32 : i32, i32, i32
  }
}

module attributes {stable_mosaic.version = 11 : i64} {
  func.func @_linear_kernel(%arg0: i32, %arg1: i32, %arg2: i32, %arg3: memref<1x16x32xbf16, #tpu.memory_space<vmem>>, %arg4: memref<32x32xbf16, #tpu.memory_space<vmem>>, %arg5: memref<1x32xf32, #tpu.memory_space<vmem>>, %arg6: memref<1x16x32xbf16, #tpu.memory_space<vmem>>, %arg7: memref<1x16x32xbf16, #tpu.memory_space<vmem>>) attributes {dimension_semantics = [#tpu.dimension_semantics<parallel>, #tpu.dimension_semantics<parallel>, #tpu.dimension_semantics<parallel>], iteration_bounds = array<i64: 1, 1, 1>, scalar_prefetch = 0 : i64, scratch_operands = 0 : i64, tpu.core_type = #tpu.core_type<tc>, window_params = [{transform_indices = @transform_0, window_bounds = array<i64: 1, 16, 32>}, {transform_indices = @transform_1, window_bounds = array<i64: 32, 32>}, {transform_indices = @transform_2, window_bounds = array<i64: 1, 32>}, {transform_indices = @transform_3, window_bounds = array<i64: 1, 16, 32>}, {transform_indices = @transform_4, window_bounds = array<i64: 1, 16, 32>}]} {
    %c0 = arith.constant 0 : index
    %c0_0 = arith.constant 0 : index
    %c0_1 = arith.constant 0 : index
    %0 = vector.load %arg3[%c0, %c0_0, %c0_1] : memref<1x16x32xbf16, #tpu.memory_space<vmem>>, vector<1x16x32xbf16>
    %1 = vector.shape_cast %0 : vector<1x16x32xbf16> to vector<16x32xbf16>
    %c0_2 = arith.constant 0 : index
    %c0_3 = arith.constant 0 : index
    %2 = vector.load %arg4[%c0_2, %c0_3] : memref<32x32xbf16, #tpu.memory_space<vmem>>, vector<32x32xbf16>
    %cst = arith.constant dense<0.000000e+00> : vector<16x32xf32>
    %3 = tpu.matmul %1, %2, %cst {dimension_numbers = #tpu.dot_dimension_numbers<[1], [0], [0], [1], [0, 0, 1, 1], [], []>} : vector<16x32xbf16>, vector<32x32xbf16>, vector<16x32xf32> -> vector<16x32xf32>
    %c0_4 = arith.constant 0 : index
    %c0_5 = arith.constant 0 : index
    %4 = vector.load %arg5[%c0_4, %c0_5] : memref<1x32xf32, #tpu.memory_space<vmem>>, vector<1x32xf32>
    %5 = vector.broadcast %4 : vector<1x32xf32> to vector<16x32xf32>
    %6 = arith.addf %3, %5 : vector<16x32xf32>
    %c0_6 = arith.constant 0 : index
    %c0_7 = arith.constant 0 : index
    %c0_8 = arith.constant 0 : index
    %7 = vector.load %arg6[%c0_6, %c0_7, %c0_8] : memref<1x16x32xbf16, #tpu.memory_space<vmem>>, vector<1x16x32xbf16>
    %8 = vector.shape_cast %7 : vector<1x16x32xbf16> to vector<16x32xbf16>
    %9 = arith.extf %8 : vector<16x32xbf16> to vector<16x32xf32>
    %10 = arith.addf %6, %9 : vector<16x32xf32>
    %11 = arith.truncf %10 : vector<16x32xf32> to vector<16x32xbf16>
    %c0_9 = arith.constant 0 : index
    %c0_10 = arith.constant 0 : index
    %c0_11 = arith.constant 0 : index
    %12 = vector.load %arg7[%c0_9, %c0_10, %c0_11] : memref<1x16x32xbf16, #tpu.memory_space<vmem>>, vector<1x16x32xbf16>
    %13 = vector.shape_cast %12 : vector<1x16x32xbf16> to vector<16x32xbf16>
    %14 = vector.shape_cast %11 : vector<16x32xbf16> to vector<1x16x32xbf16>
    tpu.vector_store %arg7[%c0_9, %c0_10, %c0_11], %14 {strides = array<i32>} : memref<1x16x32xbf16, #tpu.memory_space<vmem>>, vector<1x16x32xbf16>,
    return
  }
  func.func @transform_0(%arg0: i32, %arg1: i32, %arg2: i32) -> (i32, i32, i32) {
    %c0_i32 = arith.constant 0 : i32
    %c0_i32_0 = arith.constant 0 : i32
    return %arg0, %arg1, %c0_i32 : i32, i32, i32
  }
  func.func @transform_1(%arg0: i32, %arg1: i32, %arg2: i32) -> (i32, i32) {
    %c0_i32 = arith.constant 0 : i32
    %c0_i32_0 = arith.constant 0 : i32
    return %c0_i32, %arg2 : i32, i32
  }
  func.func @transform_2(%arg0: i32, %arg1: i32, %arg2: i32) -> (i32, i32) {
    %c0_i32 = arith.constant 0 : i32
    %c0_i32_0 = arith.constant 0 : i32
    return %c0_i32, %arg2 : i32, i32
  }
  func.func @transform_3(%arg0: i32, %arg1: i32, %arg2: i32) -> (i32, i32, i32) {
    %c0_i32 = arith.constant 0 : i32
    return %arg0, %arg1, %arg2 : i32, i32, i32
  }
  func.func @transform_4(%arg0: i32, %arg1: i32, %arg2: i32) -> (i32, i32, i32) {
    %c0_i32 = arith.constant 0 : i32
    return %arg0, %arg1, %arg2 : i32, i32, i32
  }
}

module attributes {stable_mosaic.version = 11 : i64} {
  func.func @_linear_kernel(%arg0: i32, %arg1: i32, %arg2: i32, %arg3: memref<1x16x32xbf16, #tpu.memory_space<vmem>>, %arg4: memref<32x128xbf16, #tpu.memory_space<vmem>>, %arg5: memref<1x128xf32, #tpu.memory_space<vmem>>, %arg6: memref<1x32xf32, #tpu.memory_space<vmem>>, %arg7: memref<1x32xf32, #tpu.memory_space<vmem>>, %arg8: memref<1x16x128xbf16, #tpu.memory_space<vmem>>) attributes {dimension_semantics = [#tpu.dimension_semantics<parallel>, #tpu.dimension_semantics<parallel>, #tpu.dimension_semantics<parallel>], iteration_bounds = array<i64: 1, 1, 1>, scalar_prefetch = 0 : i64, scratch_operands = 0 : i64, tpu.core_type = #tpu.core_type<tc>, window_params = [{transform_indices = @transform_0, window_bounds = array<i64: 1, 16, 32>}, {transform_indices = @transform_1, window_bounds = array<i64: 32, 128>}, {transform_indices = @transform_2, window_bounds = array<i64: 1, 128>}, {pipeline_mode = #tpu.pipeline_mode<synchronous>, transform_indices = @transform_3, window_bounds = array<i64: 1, 32>}, {pipeline_mode = #tpu.pipeline_mode<synchronous>, transform_indices = @transform_4, window_bounds = array<i64: 1, 32>}, {transform_indices = @transform_5, window_bounds = array<i64: 1, 16, 128>}]} {
    %c0 = arith.constant 0 : index
    %c0_0 = arith.constant 0 : index
    %c0_1 = arith.constant 0 : index
    %0 = vector.load %arg3[%c0, %c0_0, %c0_1] : memref<1x16x32xbf16, #tpu.memory_space<vmem>>, vector<1x16x32xbf16>
    %1 = vector.shape_cast %0 : vector<1x16x32xbf16> to vector<16x32xbf16>
    %2 = arith.extf %1 : vector<16x32xbf16> to vector<16x32xf32>
    %cst = arith.constant dense<0.000000e+00> : vector<16xf32>
    %3 = vector.multi_reduction <add>, %2, %cst [1] : vector<16x32xf32> to vector<16xf32>
    %4 = vector.shape_cast %3 : vector<16xf32> to vector<16x1xf32>
    %cst_2 = arith.constant 3.200000e+01 : f32
    %5 = vector.broadcast %cst_2 : f32 to vector<16x1xf32>
    %6 = arith.divf %4, %5 : vector<16x1xf32>
    %7 = vector.broadcast %6 : vector<16x1xf32> to vector<16x32xf32>
    %8 = arith.subf %2, %7 : vector<16x32xf32>
    %9 = arith.mulf %8, %8 : vector<16x32xf32>
    %cst_3 = arith.constant dense<0.000000e+00> : vector<16xf32>
    %10 = vector.multi_reduction <add>, %9, %cst_3 [1] : vector<16x32xf32> to vector<16xf32>
    %11 = vector.shape_cast %10 : vector<16xf32> to vector<16x1xf32>
    %cst_4 = arith.constant 3.200000e+01 : f32
    %12 = vector.broadcast %cst_4 : f32 to vector<16x1xf32>
    %13 = arith.divf %11, %12 : vector<16x1xf32>
    %cst_5 = arith.constant 9.99999974E-6 : f32
    %14 = vector.broadcast %cst_5 : f32 to vector<16x1xf32>
    %15 = arith.addf %13, %14 : vector<16x1xf32>
    %16 = math.rsqrt %15 : vector<16x1xf32>
    %17 = vector.broadcast %16 : vector<16x1xf32> to vector<16x32xf32>
    %18 = arith.mulf %8, %17 : vector<16x32xf32>
    %c0_6 = arith.constant 0 : index
    %c0_7 = arith.constant 0 : index
    %19 = vector.load %arg6[%c0_6, %c0_7] : memref<1x32xf32, #tpu.memory_space<vmem>>, vector<1x32xf32>
    %20 = vector.broadcast %19 : vector<1x32xf32> to vector<16x32xf32>
    %21 = arith.mulf %18, %20 : vector<16x32xf32>
    %c0_8 = arith.constant 0 : index
    %c0_9 = arith.constant 0 : index
    %22 = vector.load %arg7[%c0_8, %c0_9] : memref<1x32xf32, #tpu.memory_space<vmem>>, vector<1x32xf32>
    %23 = vector.broadcast %22 : vector<1x32xf32> to vector<16x32xf32>
    %24 = arith.addf %21, %23 : vector<16x32xf32>
    %25 = arith.truncf %24 : vector<16x32xf32> to vector<16x32xbf16>
    %c0_10 = arith.constant 0 : index
    %c0_11 = arith.constant 0 : index
    %26 = vector.load %arg4[%c0_10, %c0_11] : memref<32x128xbf16, #tpu.memory_space<vmem>>, vector<32x128xbf16>
    %cst_12 = arith.constant dense<0.000000e+00> : vector<16x128xf32>
    %27 = tpu.matmul %25, %26, %cst_12 {dimension_numbers = #tpu.dot_dimension_numbers<[1], [0], [0], [1], [0, 0, 1, 1], [], []>} : vector<16x32xbf16>, vector<32x128xbf16>, vector<16x128xf32> -> vector<16x128xf32>
    %c0_13 = arith.constant 0 : index
    %c0_14 = arith.constant 0 : index
    %28 = vector.load %arg5[%c0_13, %c0_14] : memref<1x128xf32, #tpu.memory_space<vmem>>, vector<1x128xf32>
    %29 = vector.broadcast %28 : vector<1x128xf32> to vector<16x128xf32>
    %30 = arith.addf %27, %29 : vector<16x128xf32>
    %cst_15 = arith.constant 5.000000e-01 : f32
    %31 = vector.broadcast %cst_15 : f32 to vector<16x128xf32>
    %32 = arith.mulf %31, %30 : vector<16x128xf32>
    %cst_16 = arith.constant 4.471500e-02 : f32
    %33 = vector.broadcast %cst_16 : f32 to vector<16x128xf32>
    %34 = arith.mulf %33, %30 : vector<16x128xf32>
    %35 = arith.mulf %34, %30 : vector<16x128xf32>
    %36 = arith.mulf %35, %30 : vector<16x128xf32>
    %37 = arith.addf %30, %36 : vector<16x128xf32>
    %cst_17 = arith.constant 0.797884583 : f32
    %38 = vector.broadcast %cst_17 : f32 to vector<16x128xf32>
    %39 = arith.mulf %38, %37 : vector<16x128xf32>
    %40 = math.tanh %39 : vector<16x128xf32>
    %cst_18 = arith.constant 1.000000e+00 : f32
    %41 = vector.broadcast %cst_18 : f32 to vector<16x128xf32>
    %42 = arith.addf %41, %40 : vector<16x128xf32>
    %43 = arith.mulf %32, %42 : vector<16x128xf32>
    %44 = arith.truncf %43 : vector<16x128xf32> to vector<16x128xbf16>
    %c0_19 = arith.constant 0 : index
    %c0_20 = arith.constant 0 : index
    %c0_21 = arith.constant 0 : index
    %45 = vector.load %arg8[%c0_19, %c0_20, %c0_21] : memref<1x16x128xbf16, #tpu.memory_space<vmem>>, vector<1x16x128xbf16>
    %46 = vector.shape_cast %45 : vector<1x16x128xbf16> to vector<16x128xbf16>
    %47 = vector.shape_cast %44 : vector<16x128xbf16> to vector<1x16x128xbf16>
    tpu.vector_store %arg8[%c0_19, %c0_20, %c0_21], %47 {strides = array<i32>} : memref<1x16x128xbf16, #tpu.memory_space<vmem>>, vector<1x16x128xbf16>,
    return
  }
  func.func @transform_0(%arg0: i32, %arg1: i32, %arg2: i32) -> (i32, i32, i32) {
    %c0_i32 = arith.constant 0 : i32
    %c0_i32_0 = arith.constant 0 : i32
    return %arg0, %arg1, %c0_i32 : i32, i32, i32
  }
  func.func @transform_1(%arg0: i32, %arg1: i32, %arg2: i32) -> (i32, i32) {
    %c0_i32 = arith.constant 0 : i32
    %c0_i32_0 = arith.constant 0 : i32
    return %c0_i32, %arg2 : i32, i32
  }
  func.func @transform_2(%arg0: i32, %arg1: i32, %arg2: i32) -> (i32, i32) {
    %c0_i32 = arith.constant 0 : i32
    %c0_i32_0 = arith.constant 0 : i32
    return %c0_i32, %arg2 : i32, i32
  }
  func.func @transform_3(%arg0: i32, %arg1: i32, %arg2: i32) -> (i32, i32) {
    %c0_i32 = arith.constant 0 : i32
    %c0_i32_0 = arith.constant 0 : i32
    %c0_i32_1 = arith.constant 0 : i32
    return %c0_i32, %c0_i32_0 : i32, i32
  }
  func.func @transform_4(%arg0: i32, %arg1: i32, %arg2: i32) -> (i32, i32) {
    %c0_i32 = arith.constant 0 : i32
    %c0_i32_0 = arith.constant 0 : i32
    %c0_i32_1 = arith.constant 0 : i32
    return %c0_i32, %c0_i32_0 : i32, i32
  }
  func.func @transform_5(%arg0: i32, %arg1: i32, %arg2: i32) -> (i32, i32, i32) {
    %c0_i32 = arith.constant 0 : i32
    return %arg0, %arg1, %arg2 : i32, i32, i32
  }
}

module attributes {stable_mosaic.version = 11 : i64} {
  func.func @_linear_kernel(%arg0: i32, %arg1: i32, %arg2: i32, %arg3: memref<1x16x128xbf16, #tpu.memory_space<vmem>>, %arg4: memref<128x32xbf16, #tpu.memory_space<vmem>>, %arg5: memref<1x32xf32, #tpu.memory_space<vmem>>, %arg6: memref<1x16x32xbf16, #tpu.memory_space<vmem>>, %arg7: memref<1x16x32xbf16, #tpu.memory_space<vmem>>) attributes {dimension_semantics = [#tpu.dimension_semantics<parallel>, #tpu.dimension_semantics<parallel>, #tpu.dimension_semantics<parallel>], iteration_bounds = array<i64: 1, 1, 1>, scalar_prefetch = 0 : i64, scratch_operands = 0 : i64, tpu.core_type = #tpu.core_type<tc>, window_params = [{transform_indices = @transform_0, window_bounds = array<i64: 1, 16, 128>}, {transform_indices = @transform_1, window_bounds = array<i64: 128, 32>}, {transform_indices = @transform_2, window_bounds = array<i64: 1, 32>}, {transform_indices = @transform_3, window_bounds = array<i64: 1, 16, 32>}, {transform_indices = @transform_4, window_bounds = array<i64: 1, 16, 32>}]} {
    %c0 = arith.constant 0 : index
    %c0_0 = arith.constant 0 : index
    %c0_1 = arith.constant 0 : index
    %0 = vector.load %arg3[%c0, %c0_0, %c0_1] : memref<1x16x128xbf16, #tpu.memory_space<vmem>>, vector<1x16x128xbf16>
    %1 = vector.shape_cast %0 : vector<1x16x128xbf16> to vector<16x128xbf16>
    %c0_2 = arith.constant 0 : index
    %c0_3 = arith.constant 0 : index
    %2 = vector.load %arg4[%c0_2, %c0_3] : memref<128x32xbf16, #tpu.memory_space<vmem>>, vector<128x32xbf16>
    %cst = arith.constant dense<0.000000e+00> : vector<16x32xf32>
    %3 = tpu.matmul %1, %2, %cst {dimension_numbers = #tpu.dot_dimension_numbers<[1], [0], [0], [1], [0, 0, 1, 1], [], []>} : vector<16x128xbf16>, vector<128x32xbf16>, vector<16x32xf32> -> vector<16x32xf32>
    %c0_4 = arith.constant 0 : index
    %c0_5 = arith.constant 0 : index
    %4 = vector.load %arg5[%c0_4, %c0_5] : memref<1x32xf32, #tpu.memory_space<vmem>>, vector<1x32xf32>
    %5 = vector.broadcast %4 : vector<1x32xf32> to vector<16x32xf32>
    %6 = arith.addf %3, %5 : vector<16x32xf32>
    %c0_6 = arith.constant 0 : index
    %c0_7 = arith.constant 0 : index
    %c0_8 = arith.constant 0 : index
    %7 = vector.load %arg6[%c0_6, %c0_7, %c0_8] : memref<1x16x32xbf16, #tpu.memory_space<vmem>>, vector<1x16x32xbf16>
    %8 = vector.shape_cast %7 : vector<1x16x32xbf16> to vector<16x32xbf16>
    %9 = arith.extf %8 : vector<16x32xbf16> to vector<16x32xf32>
    %10 = arith.addf %6, %9 : vector<16x32xf32>
    %11 = arith.truncf %10 : vector<16x32xf32> to vector<16x32xbf16>
    %c0_9 = arith.constant 0 : index
    %c0_10 = arith.constant 0 : index
    %c0_11 = arith.constant 0 : index
    %12 = vector.load %arg7[%c0_9, %c0_10, %c0_11] : memref<1x16x32xbf16, #tpu.memory_space<vmem>>, vector<1x16x32xbf16>
    %13 = vector.shape_cast %12 : vector<1x16x32xbf16> to vector<16x32xbf16>
    %14 = vector.shape_cast %11 : vector<16x32xbf16> to vector<1x16x32xbf16>
    tpu.vector_store %arg7[%c0_9, %c0_10, %c0_11], %14 {strides = array<i32>} : memref<1x16x32xbf16, #tpu.memory_space<vmem>>, vector<1x16x32xbf16>,
    return
  }
  func.func @transform_0(%arg0: i32, %arg1: i32, %arg2: i32) -> (i32, i32, i32) {
    %c0_i32 = arith.constant 0 : i32
    %c0_i32_0 = arith.constant 0 : i32
    return %arg0, %arg1, %c0_i32 : i32, i32, i32
  }
  func.func @transform_1(%arg0: i32, %arg1: i32, %arg2: i32) -> (i32, i32) {
    %c0_i32 = arith.constant 0 : i32
    %c0_i32_0 = arith.constant 0 : i32
    return %c0_i32, %arg2 : i32, i32
  }
  func.func @transform_2(%arg0: i32, %arg1: i32, %arg2: i32) -> (i32, i32) {
    %c0_i32 = arith.constant 0 : i32
    %c0_i32_0 = arith.constant 0 : i32
    return %c0_i32, %arg2 : i32, i32
  }
  func.func @transform_3(%arg0: i32, %arg1: i32, %arg2: i32) -> (i32, i32, i32) {
    %c0_i32 = arith.constant 0 : i32
    return %arg0, %arg1, %arg2 : i32, i32, i32
  }
  func.func @transform_4(%arg0: i32, %arg1: i32, %arg2: i32) -> (i32, i32, i32) {
    %c0_i32 = arith.constant 0 : i32
    return %arg0, %arg1, %arg2 : i32, i32, i32
  }
}

module attributes {stable_mosaic.version = 11 : i64} {
  func.func @_layernorm_kernel(%arg0: i32, %arg1: memref<16x32xbf16, #tpu.memory_space<vmem>>, %arg2: memref<1x32xf32, #tpu.memory_space<vmem>>, %arg3: memref<1x32xf32, #tpu.memory_space<vmem>>, %arg4: memref<16x32xf32, #tpu.memory_space<vmem>>) attributes {dimension_semantics = [#tpu.dimension_semantics<parallel>], iteration_bounds = array<i64: 1>, scalar_prefetch = 0 : i64, scratch_operands = 0 : i64, tpu.core_type = #tpu.core_type<tc>, window_params = [{transform_indices = @transform_0, window_bounds = array<i64: 16, 32>}, {pipeline_mode = #tpu.pipeline_mode<synchronous>, transform_indices = @transform_1, window_bounds = array<i64: 1, 32>}, {pipeline_mode = #tpu.pipeline_mode<synchronous>, transform_indices = @transform_2, window_bounds = array<i64: 1, 32>}, {transform_indices = @transform_3, window_bounds = array<i64: 16, 32>}]} {
    %c0 = arith.constant 0 : index
    %c0_0 = arith.constant 0 : index
    %0 = vector.load %arg1[%c0, %c0_0] : memref<16x32xbf16, #tpu.memory_space<vmem>>, vector<16x32xbf16>
    %1 = arith.extf %0 : vector<16x32xbf16> to vector<16x32xf32>
    %cst = arith.constant dense<0.000000e+00> : vector<16xf32>
    %2 = vector.multi_reduction <add>, %1, %cst [1] : vector<16x32xf32> to vector<16xf32>
    %3 = vector.shape_cast %2 : vector<16xf32> to vector<16x1xf32>
    %cst_1 = arith.constant 3.200000e+01 : f32
    %4 = vector.broadcast %cst_1 : f32 to vector<16x1xf32>
    %5 = arith.divf %3, %4 : vector<16x1xf32>
    %6 = vector.broadcast %5 : vector<16x1xf32> to vector<16x32xf32>
    %7 = arith.subf %1, %6 : vector<16x32xf32>
    %8 = arith.mulf %7, %7 : vector<16x32xf32>
    %cst_2 = arith.constant dense<0.000000e+00> : vector<16xf32>
    %9 = vector.multi_reduction <add>, %8, %cst_2 [1] : vector<16x32xf32> to vector<16xf32>
    %10 = vector.shape_cast %9 : vector<16xf32> to vector<16x1xf32>
    %cst_3 = arith.constant 3.200000e+01 : f32
    %11 = vector.broadcast %cst_3 : f32 to vector<16x1xf32>
    %12 = arith.divf %10, %11 : vector<16x1xf32>
    %cst_4 = arith.constant 9.99999974E-6 : f32
    %13 = vector.broadcast %cst_4 : f32 to vector<16x1xf32>
    %14 = arith.addf %12, %13 : vector<16x1xf32>
    %15 = math.rsqrt %14 : vector<16x1xf32>
    %16 = vector.broadcast %15 : vector<16x1xf32> to vector<16x32xf32>
    %17 = arith.mulf %7, %16 : vector<16x32xf32>
    %c0_5 = arith.constant 0 : index
    %c0_6 = arith.constant 0 : index
    %18 = vector.load %arg2[%c0_5, %c0_6] : memref<1x32xf32, #tpu.memory_space<vmem>>, vector<1x32xf32>
    %19 = vector.broadcast %18 : vector<1x32xf32> to vector<16x32xf32>
    %20 = arith.mulf %17, %19 : vector<16x32xf32>
    %c0_7 = arith.constant 0 : index
    %c0_8 = arith.constant 0 : index
    %21 = vector.load %arg3[%c0_7, %c0_8] : memref<1x32xf32, #tpu.memory_space<vmem>>, vector<1x32xf32>
    %22 = vector.broadcast %21 : vector<1x32xf32> to vector<16x32xf32>
    %23 = arith.addf %20, %22 : vector<16x32xf32>
    %c0_9 = arith.constant 0 : index
    %c0_10 = arith.constant 0 : index
    %24 = vector.load %arg4[%c0_9, %c0_10] : memref<16x32xf32, #tpu.memory_space<vmem>>, vector<16x32xf32>
    tpu.vector_store %arg4[%c0_9, %c0_10], %23 {strides = array<i32>} : memref<16x32xf32, #tpu.memory_space<vmem>>, vector<16x32xf32>,
    return
  }
  func.func @transform_0(%arg0: i32) -> (i32, i32) {
    %c0_i32 = arith.constant 0 : i32
    %c0_i32_0 = arith.constant 0 : i32
    return %arg0, %c0_i32 : i32, i32
  }
  func.func @transform_1(%arg0: i32) -> (i32, i32) {
    %c0_i32 = arith.constant 0 : i32
    %c0_i32_0 = arith.constant 0 : i32
    %c0_i32_1 = arith.constant 0 : i32
    return %c0_i32, %c0_i32_0 : i32, i32
  }
  func.func @transform_2(%arg0: i32) -> (i32, i32) {
    %c0_i32 = arith.constant 0 : i32
    %c0_i32_0 = arith.constant 0 : i32
    %c0_i32_1 = arith.constant 0 : i32
    return %c0_i32, %c0_i32_0 : i32, i32
  }
  func.func @transform_3(%arg0: i32) -> (i32, i32) {
    %c0_i32 = arith.constant 0 : i32
    %c0_i32_0 = arith.constant 0 : i32
    return %arg0, %c0_i32 : i32, i32
  }
}

</mosaic_0001>

<bundles_post_ra>
// kernel: audio_encoder_forward.15
= control target key start
LH: loop header
LB: loop body
LE: loop exit
PB: predicated region body
PF: predicated region fallthrough
CT: control target
= control target key end

     0   :  { %vm25_vm0 = vcmask 261120   ;;  %v161_v5 = vmov 32.0   ;;  %vm129_vm8 = vcmask 781312   ;;  %s221_s0 = inlined_call_operand.vmem [shape: bf16[1,16,32], index: 0, kind: input, shape index: {}]   ;;  %s222_s3 = inlined_call_operand.vmem [shape: f32[1,32], index: 3, kind: input, shape index: {}]   ;;  %s223_s4 = inlined_call_operand.vmem [shape: f32[1,32], index: 4, kind: input, shape index: {}]   ;;  %s224_s2 = inlined_call_operand.vmem [shape: f32[1,96], index: 2, kind: input, shape index: {}]   ;;  %s225_s1 = inlined_call_operand.vmem [shape: bf16[32,96], index: 1, kind: input, shape index: {}]   ;;  %s226_s5 = inlined_call_operand.vmem [shape: bf16[1,16,96], index: 5, kind: output, shape index: {}]  }
   0x1   :  { %v148_v0 = vld [vmem:[%s221_s0] sm:$0xff]   ;;  %155 = vrcp.f32 %v161_v5  ;;  %v146_v22 = vld [vmem:[%s225_s1 + $0x8] sm:$0xff] }
   0x2   :  { %v149_v1 = vunpack.c.l.bf16 %v148_v0  ;;  %v150_v3 = vunpack.c.h.bf16 %v148_v0  ;;  %119 = vmatpush.bf16.msra.mxu0 %v146_v22  ;;  %v145_v24 = vld [vmem:[%s225_s1] sm:$0xff] }
   0x3   :  { %v152_v43 = vld [vmem:[%s222_s3] ss:$0 sm:$0xff] }
   0x4   :  { %v26_v2 = vsel %vm25_vm0, %v149_v1, 0.0  ;;  %v29_v4 = vsel %vm25_vm0, %v150_v3, 0.0  ;;  %v153_v48 = vld [vmem:[%s223_s4] ss:$0 sm:$0xff] }
   0x5   :  { %27 = vadd.xlane.f32.xlu0 %v26_v2  ;;  %v154_v53 = vld [vmem:[%s224_s2] ss:$0 sm:$0xff] }
   0x6   :  { %120 = vmatpush.bf16.msra.mxu0 %v145_v24 }
   0x7   :  { %v156_v6 = vpop.eup %155 }
   0x8   :  { %v33_v7 = vmul.f32 32.0, %v156_v6  ;;  %vm37_vm1 = vweird.f32 %v156_v6 }
   0xa   :  { %v34_v8 = vsub.f32 1.0, %v33_v7 }
   0xc   :  { %v35_v9 = vmul.f32 %v156_v6, %v34_v8 }
   0xd   :  { %30 = vadd.xlane.f32.xlu0 %v29_v4 }
   0xe   :  { %v36_v10 = vadd.f32 %v156_v6, %v35_v9 }
  0x10   :  { %v38_v11 = vsel %vm37_vm1, %v156_v6, %v36_v10 }
  0x78   :  { %v28_v12 = vpop.xlane.xlu0 %27 }
  0x79   :  { %v39_v13 = vmul.f32 %v38_v11, %v28_v12 }
  0x7b   :  { %v41_v14 = vsub.f32 %v149_v1, %v39_v13 }
  0x7d   :  { %v43_v15 = vmul.f32 %v41_v14, %v41_v14 }
  0x7f   :  { %v45_v16 = vsel %vm25_vm0, %v43_v15, 0.0 }
  0x80   :  { %46 = vadd.xlane.f32.xlu1 %v45_v16  ;;  %v31_v17 = vpop.xlane.xlu0 %30 }
  0x81   :  { %v40_v18 = vmul.f32 %v38_v11, %v31_v17 }
  0x83   :  { %v42_v19 = vsub.f32 %v150_v3, %v40_v18 }
  0x85   :  { %v44_v20 = vmul.f32 %v42_v19, %v42_v19 }
  0x87   :  { %v48_v21 = vsel %vm25_vm0, %v44_v20, 0.0 }
  0x88   :  { %49 = vadd.xlane.f32.xlu1 %v48_v21 }
  0xf3   :  { %v47_v23 = vpop.xlane.xlu1 %46 }
  0xf4   :  { %v51_v25 = vmul.f32 %v47_v23, %v38_v11 }
  0xf6   :  { %v53_v26 = vadd.f32 1e-05, %v51_v25 }
  0xf8   :  { %157 = vrsqrt.f32 %v53_v26  ;;  %vm61_vm3 = vweird.f32 %v53_v26 }
  0xfb   :  { %v50_v27 = vpop.xlane.xlu1 %49 }
  0xfc   :  { %v52_v28 = vmul.f32 %v50_v27, %v38_v11 }
  0xfe   :  { %v158_v29 = vpop.eup %157  ;;  %v54_v30 = vadd.f32 1e-05, %v52_v28 }
  0xff   :  { %v56_v31 = vmul.f32 %v158_v29, %v53_v26  ;;  %vm62_vm2 = vweird.f32 %v158_v29 }
 0x100   :  { %159 = vrsqrt.f32 %v54_v30  ;;  %vm63_vm4 = vmor %vm61_vm3, %vm62_vm2  ;;  %vm71_vm6 = vweird.f32 %v54_v30 }
 0x101   :  { %v57_v32 = vmul.f32 %v158_v29, %v56_v31 }
 0x103   :  { %v58_v33 = vmul.f32 0.5, %v57_v32 }
 0x105   :  { %v59_v34 = vsub.f32 1.5, %v58_v33 }
 0x106   :  { %v160_v35 = vpop.eup %159 }
 0x107   :  { %v60_v36 = vmul.f32 %v158_v29, %v59_v34  ;;  %v66_v37 = vmul.f32 %v160_v35, %v54_v30  ;;  %vm72_vm5 = vweird.f32 %v160_v35 }
 0x108   :  { %vm73_vm7 = vmor %vm71_vm6, %vm72_vm5 }
 0x109   :  { %v67_v38 = vmul.f32 %v160_v35, %v66_v37  ;;  %v64_v39 = vsel %vm63_vm4, %v158_v29, %v60_v36 }
 0x10a   :  { %v75_v42 = vmul.f32 %v64_v39, %v41_v14 }
 0x10b   :  { %v68_v40 = vmul.f32 0.5, %v67_v38 }
 0x10c   :  { %v81_v47 = vmul.f32 %v152_v43, %v75_v42 }
 0x10d   :  { %v69_v41 = vsub.f32 1.5, %v68_v40 }
 0x10e   :  { %v87_v50 = vadd.f32 %v153_v48, %v81_v47 }
 0x10f   :  { %v70_v44 = vmul.f32 %v160_v35, %v69_v41 }
 0x111   :  { %v74_v45 = vsel %vm73_vm7, %v160_v35, %v70_v44 }
 0x112   :  { %v76_v46 = vmul.f32 %v74_v45, %v42_v19 }
 0x114   :  { %v82_v49 = vmul.f32 %v152_v43, %v76_v46 }
 0x116   :  { %v88_v51 = vadd.f32 %v153_v48, %v82_v49 }
 0x118   :  { %v89_v52 = vpack.c.bf16 %v88_v51, %v87_v50 }
 0x11a   :  { %144 = vmatmul.msk.bf16.vlgmr.msra.gmra.mxu0 %vm25_vm0, %v89_v52 }
 0x197   :  { %v122_v54 = vpop.f32.mrf.mxu0 }
 0x198   :  { %v123_v55 = vadd.f32 %v154_v53, %v122_v54 }
 0x19a   :  { %v127_v56 = vpack.c.bf16 %v123_v55, %v123_v55 }
 0x19c   :  { %130 = vst.msk [vmem:[%s226_s5] sm:$0xf] %vm129_vm8, %v127_v56 }
 0x19f   :  { %v124_v57 = vpop.f32.mrf.mxu0 }
 0x1a0   :  { %v125_v58 = vadd.f32 %v154_v53, %v124_v57 }
 0x1a2   :  { %v128_v59 = vpack.c.bf16 %v125_v58, %v125_v58 }
 0x1a4   :  { %131 = vst.msk [vmem:[%s226_s5 + $0x4] sm:$0xf] %vm129_vm8, %v128_v59 }

// kernel: audio_encoder_forward.13
= control target key start
LH: loop header
LB: loop body
LE: loop exit
PB: predicated region body
PF: predicated region fallthrough
CT: control target
= control target key end

     0   :  { %vm52_vm0 = vcmask 1043456   ;;  %vm45_vm1 = vcmask 195584   ;;  %vm115_vm2 = vcmask 257024   ;;  %s203_s1 = inlined_call_operand.vmem [shape: bf16[24,32], index: 1, kind: input, shape index: {}]   ;;  %s204_s2 = inlined_call_operand.vmem [shape: f32[1,32], index: 2, kind: input, shape index: {}]   ;;  %s205_s0 = inlined_call_operand.vmem [shape: bf16[1,32,24], index: 0, kind: input, shape index: {}]   ;;  %s206_s3 = inlined_call_operand.vmem [shape: bf16[1,32,32], index: 3, kind: output, shape index: {}]  }
   0x1   :  { %v21_v0 = vld [vmem:[%s203_s1 + $0x8] sm:$0xf]  ;;  %v140_v4 = vld [vmem:[%s203_s1] sm:$0xff] }
   0x2   :  { %v41_v1 = vunpack.c.l.b16 %v21_v0  ;;  %v138_v5 = vld [vmem:[%s205_s0] sm:$0xff]  ;;  %v139_v6 = vld [vmem:[%s205_s0 + $0x8] sm:$0xff] }
   0x3   :  { %v143_v7 = vld [vmem:[%s204_s2] ss:$0 sm:$0xff] }
   0x4   :  { %v43_v2 = vpack.c.b16 %v41_v1, %v41_v1 }
   0x6   :  { %v54_v3 = vsel %vm52_vm0, %v43_v2, 0 }
   0x7   :  { %62 = vmatpush.bf16.msra.mxu0 %v54_v3  ;;  %141 = vmatpush.bf16.msra.mxu1 %v54_v3 }
   0xb   :  { %63 = vmatpush.bf16.msra.mxu0 %v140_v4  ;;  %142 = vmatpush.bf16.msra.mxu1 %v140_v4 }
   0xe   :  { %136 = vmatmul.msk.bf16.vlgmr.msra.gmra.mxu0 %vm45_vm1, %v138_v5  ;;  %137 = vmatmul.msk.bf16.vlgmr.msra.gmra.mxu1 %vm45_vm1, %v139_v6 }
  0x8b   :  { %v65_v8 = vpop.f32.mrf.mxu0  ;;  %v70_v9 = vpop.f32.mrf.mxu1 }
  0x8c   :  { %v66_v10 = vadd.f32 %v143_v7, %v65_v8  ;;  %v71_v11 = vadd.f32 %v143_v7, %v70_v9 }
  0x8e   :  { %v79_v12 = vmul.f32 0.044715, %v66_v10  ;;  %v81_v13 = vmul.f32 0.044715, %v71_v11  ;;  %v75_v36 = vmul.f32 0.5, %v66_v10  ;;  %v77_v40 = vmul.f32 0.5, %v71_v11 }
  0x90   :  { %v83_v14 = vmul.f32 %v79_v12, %v66_v10  ;;  %v85_v15 = vmul.f32 %v81_v13, %v71_v11 }
  0x92   :  { %v87_v16 = vmul.f32 %v83_v14, %v66_v10  ;;  %v89_v17 = vmul.f32 %v85_v15, %v71_v11 }
  0x93   :  { %v67_v18 = vpop.f32.mrf.mxu0  ;;  %v72_v19 = vpop.f32.mrf.mxu1 }
  0x94   :  { %v91_v20 = vadd.f32 %v87_v16, %v66_v10  ;;  %v93_v21 = vadd.f32 %v89_v17, %v71_v11  ;;  %v68_v22 = vadd.f32 %v143_v7, %v67_v18  ;;  %v73_v23 = vadd.f32 %v143_v7, %v72_v19 }
  0x96   :  { %v95_v24 = vmul.f32 0.7978846, %v91_v20  ;;  %v97_v25 = vmul.f32 0.7978846, %v93_v21  ;;  %v80_v26 = vmul.f32 0.044715, %v68_v22 }
  0x97   :  { %v82_v27 = vmul.f32 0.044715, %v73_v23  ;;  %v76_v48 = vmul.f32 0.5, %v68_v22  ;;  %v78_v50 = vmul.f32 0.5, %v73_v23 }
  0x98   :  { %144 = vtanh.f32 %v95_v24  ;;  %v84_v28 = vmul.f32 %v80_v26, %v68_v22 }
  0x99   :  { %146 = vtanh.f32 %v97_v25  ;;  %v86_v29 = vmul.f32 %v82_v27, %v73_v23 }
  0x9a   :  { %v88_v30 = vmul.f32 %v84_v28, %v68_v22 }
  0x9b   :  { %v90_v31 = vmul.f32 %v86_v29, %v73_v23 }
  0x9c   :  { %v92_v32 = vadd.f32 %v88_v30, %v68_v22 }
  0x9d   :  { %v94_v33 = vadd.f32 %v90_v31, %v73_v23 }
  0x9e   :  { %v145_v34 = vpop.eup %144  ;;  %v96_v38 = vmul.f32 0.7978846, %v92_v32 }
  0x9f   :  { %v147_v35 = vpop.eup %146  ;;  %v103_v37 = vadd.f32 1.0, %v145_v34  ;;  %v98_v39 = vmul.f32 0.7978846, %v94_v33 }
  0xa0   :  { %v105_v41 = vadd.f32 1.0, %v147_v35  ;;  %148 = vtanh.f32 %v96_v38 }
  0xa1   :  { %v107_v42 = vmul.f32 %v103_v37, %v75_v36  ;;  %150 = vtanh.f32 %v98_v39 }
  0xa2   :  { %v109_v43 = vmul.f32 %v105_v41, %v77_v40 }
  0xa3   :  { %v111_v44 = vpack.c.bf16 %v107_v42, %v107_v42 }
  0xa4   :  { %v113_v45 = vpack.c.bf16 %v109_v43, %v109_v43 }
  0xa5   :  { %116 = vst.msk [vmem:[%s206_s3] sm:$0xf] %vm115_vm2, %v111_v44 }
  0xa6   :  { %118 = vst.msk [vmem:[%s206_s3 + $0x8] sm:$0xf] %vm115_vm2, %v113_v45  ;;  %v149_v46 = vpop.eup %148 }
  0xa7   :  { %v151_v47 = vpop.eup %150  ;;  %v104_v49 = vadd.f32 1.0, %v149_v46 }
  0xa8   :  { %v106_v51 = vadd.f32 1.0, %v151_v47 }
  0xa9   :  { %v108_v52 = vmul.f32 %v104_v49, %v76_v48 }
  0xaa   :  { %v110_v53 = vmul.f32 %v106_v51, %v78_v50 }
  0xab   :  { %v112_v54 = vpack.c.bf16 %v108_v52, %v108_v52 }
  0xac   :  { %v114_v55 = vpack.c.bf16 %v110_v53, %v110_v53 }
  0xad   :  { %117 = vst.msk [vmem:[%s206_s3 + $0x4] sm:$0xf] %vm115_vm2, %v112_v54 }
  0xae   :  { %119 = vst.msk [vmem:[%s206_s3 + $0xc] sm:$0xf] %vm115_vm2, %v114_v55 }

// kernel: audio_encoder_forward.14
= control target key start
LH: loop header
LB: loop body
LE: loop exit
PB: predicated region body
PF: predicated region fallthrough
CT: control target
= control target key end

     0   :  { %s636_s15 = smov 0   ;;  %s638_s16 = smov 0   ;;  %s696_s0 = inlined_call_operand.vmem [shape: bf16[2,8,96], index: 0, kind: input, shape index: {}]   ;;  %s697_s1 = inlined_call_operand.vmem [shape: bf16[96,32], index: 1, kind: input, shape index: {}]   ;;  %s698_s2 = inlined_call_operand.vmem [shape: f32[1,32], index: 2, kind: input, shape index: {}]   ;;  %s699_s3 = inlined_call_operand.vmem [shape: bf16[8,32], index: 3, kind: input, shape index: {}]   ;;  %s700_s4 = inlined_call_operand.vmem [shape: bf16[2,8,32], index: 4, kind: output, shape index: {}]  }
   0x1   :  { %s640_s17 = smov 0  }
   0x2 LB: > { %s33_s18 = sadd.s32 1, %s605_s16  ;;  %p524_p0 = scmp.ge.s32.totalorder %s609_s17, 1  ;;  %s609_s17 = sphi %s640_s17, %s14_s17   ;;  %s605_s16 = sphi %s638_s16, %s702_s16   ;;  %s601_s15 = sphi %s636_s15, %s701_s15  }
   0x3   : > { %p35_p1 = scmp.ge.s32.totalorder %s33_s18, 2  ;;  %p220_p2 = scmp.lt.s32.totalorder %s609_s17, 3 }
   0x5   : > { %s704_s18 = smov (%p35_p1, %s33_s18), 0  ;;  %p221_p3 = pnand %p524_p0, %p220_p2 }
   0x6   : > { %p267_p4 = scmp.lt.s32.totalorder (!%p221_p3), %s601_s15, 1 }
   0x7   : > { %224 = sbr.rel (%p221_p3) target bundleno = 190 (0xbe), region = 36 }
   0xc   : > { %v559_v0 = vld [vmem:[%s697_s1 + $0x28] sm:$0xff]  ;;  %v558_v1 = vld [vmem:[%s697_s1 + $0x20] sm:$0xff]  ;;  %v557_v2 = vld [vmem:[%s697_s1 + $0x18] sm:$0xff]  ;;  %s706_s15 = smov (!%p267_p4, %s601_s15), 1  ;;  %vm352_vm0 = vcmask 785408   ;;  %vm382_vm1 = vcmask 257024  }
   0xd   : > { %358 = vmatpush.bf16.msra.mxu0 %v559_v0  ;;  %v556_v3 = vld [vmem:[%s697_s1 + $0x10] sm:$0xff]  ;;  %v555_v4 = vld [vmem:[%s697_s1 + $0x8] sm:$0xff]  ;;  %s525_s29 = sshll.u32 %s706_s15, 2  ;;  %v554_v5 = vld [vmem:[%s697_s1] sm:$0xff] }
   0xe   : > { %s273_s8 = scalar_lea.vmem %s696_s0, %s525_s29  ;;  %v584_v7 = vld [vmem:[%s698_s2] ss:$0 sm:$0xff]  ;;  %s297_s15 = scalar_lea.vmem %s700_s4, %s525_s29 }
   0xf   : > { %v299_v6 = vld [vmem:[%s273_s8] sm:$0xf] }
  0x10   : > { %v378_v16 = vld [vmem:[%s699_s3] sm:$0xf] }
  0x11   : > { %359 = vmatpush.bf16.msra.mxu0 %v558_v1  ;;  %v379_v20 = vunpack.c.l.bf16 %v378_v16 }
  0x15   : > { %360 = vmatpush.bf16.msra.mxu0 %v557_v2 }
  0x19   : > { %361 = vmatpush.bf16.msra.mxu0 %v556_v3 }
  0x1d   : > { %362 = vmatpush.bf16.msra.mxu0 %v555_v4 }
  0x21   : > { %363 = vmatpush.bf16.msra.mxu0 %v554_v5 }
  0x24   : > { %551 = vmatmul.msk.bf16.vlgmr.msra.gmra.mxu0 %vm352_vm0, %v299_v6 }
  0xa1   : > { %v365_v8 = vpop.f32.mrf.mxu0 }
  0xa2   : > { %v366_v9 = vadd.f32 %v584_v7, %v365_v8 }
  0xa4   : > { %v370_v10 = vmul.f32 0.044715, %v366_v9  ;;  %v369_v18 = vmul.f32 0.5, %v366_v9 }
  0xa6   : > { %v371_v11 = vmul.f32 %v370_v10, %v366_v9 }
  0xa8   : > { %v372_v12 = vmul.f32 %v371_v11, %v366_v9 }
  0xa9   : > { %v367_v13 = vpop.f32.mrf.mxu0 }
  0xaa   : > { %v373_v14 = vadd.f32 %v372_v12, %v366_v9 }
  0xac   : > { %v374_v15 = vmul.f32 0.7978846, %v373_v14 }
  0xae   : > { %585 = vtanh.f32 %v374_v15 }
  0xb4   : > { %v586_v17 = vpop.eup %585 }
  0xb5   : > { %v376_v19 = vadd.f32 1.0, %v586_v17 }
  0xb7   : > { %v377_v21 = vmul.f32 %v376_v19, %v369_v18 }
  0xb9   : > { %v380_v22 = vadd.f32 %v379_v20, %v377_v21 }
  0xbb   : > { %v381_v23 = vpack.c.bf16 %v380_v22, %v380_v22 }
  0xbd   : > { %383 = vst.msk [vmem:[%s297_s15] sm:$0xf] %vm382_vm1, %v381_v23 }
  0xbe PF: > { %s14_s17 = sadd.s32 1, %s609_s17   ;;  %s701_s15 = smov %s605_s16 }
  0xbf   : > { %p11_p5 = scmp.ge.s32.totalorder %s14_s17, 4   ;;  %s702_s16 = smov %s704_s18 }
  0xc1   :  { %13 = sbr.rel (!%p11_p5) target bundleno = 2 (0x2), region = 75 }

// kernel: audio_encoder_forward.17
= control target key start
LH: loop header
LB: loop body
LE: loop exit
PB: predicated region body
PF: predicated region fallthrough
CT: control target
= control target key end

     0   :  { %vm45_vm0 = vcmask 261120   ;;  %vm71_vm1 = vcmask 257024   ;;  %s145_s1 = inlined_call_operand.vmem [shape: bf16[32,32], index: 1, kind: input, shape index: {}]   ;;  %s146_s2 = inlined_call_operand.vmem [shape: f32[1,32], index: 2, kind: input, shape index: {}]   ;;  %s147_s0 = inlined_call_operand.vmem [shape: bf16[1,16,32], index: 0, kind: input, shape index: {}]   ;;  %s148_s3 = inlined_call_operand.vmem [shape: bf16[1,16,32], index: 3, kind: input, shape index: {}]   ;;  %s149_s4 = inlined_call_operand.vmem [shape: bf16[1,16,32], index: 4, kind: output, shape index: {}]  }
   0x1   :  { %v93_v0 = vld [vmem:[%s145_s1 + $0x8] sm:$0xff]  ;;  %v92_v1 = vld [vmem:[%s145_s1] sm:$0xff] }
   0x2   :  { %55 = vmatpush.bf16.msra.mxu0 %v93_v0  ;;  %v91_v2 = vld [vmem:[%s147_s0] sm:$0xff] }
   0x3   :  { %v95_v3 = vld [vmem:[%s148_s3] sm:$0xff]  }
   0x4   :  { %v98_v4 = vld [vmem:[%s146_s2] ss:$0 sm:$0xff]  ;;  %v96_v5 = vunpack.c.l.bf16 %v95_v3  ;;  %v97_v10 = vunpack.c.h.bf16 %v95_v3 }
   0x6   :  { %56 = vmatpush.bf16.msra.mxu0 %v92_v1 }
   0x9   :  { %90 = vmatmul.msk.bf16.vlgmr.msra.gmra.mxu0 %vm45_vm0, %v91_v2 }
  0x86   :  { %v58_v6 = vpop.f32.mrf.mxu0 }
  0x87   :  { %v59_v7 = vadd.f32 %v98_v4, %v58_v6 }
  0x89   :  { %v67_v8 = vadd.f32 %v96_v5, %v59_v7 }
  0x8b   :  { %v69_v9 = vpack.c.bf16 %v67_v8, %v67_v8 }
  0x8d   :  { %72 = vst.msk [vmem:[%s149_s4] sm:$0xf] %vm71_vm1, %v69_v9 }
  0x8e   :  { %v60_v11 = vpop.f32.mrf.mxu0 }
  0x8f   :  { %v61_v12 = vadd.f32 %v98_v4, %v60_v11 }
  0x91   :  { %v68_v13 = vadd.f32 %v97_v10, %v61_v12 }
  0x93   :  { %v70_v14 = vpack.c.bf16 %v68_v13, %v68_v13 }
  0x95   :  { %73 = vst.msk [vmem:[%s149_s4 + $0x4] sm:$0xf] %vm71_vm1, %v70_v14 }

// kernel: audio_encoder_forward.18
= control target key start
LH: loop header
LB: loop body
LE: loop exit
PB: predicated region body
PF: predicated region fallthrough
CT: control target
= control target key end

     0   :  { %vm25_vm0 = vcmask 261120   ;;  %v187_v5 = vmov 32.0   ;;  %s244_s0 = inlined_call_operand.vmem [shape: bf16[1,16,32], index: 0, kind: input, shape index: {}]   ;;  %s245_s3 = inlined_call_operand.vmem [shape: f32[1,32], index: 3, kind: input, shape index: {}]   ;;  %s246_s4 = inlined_call_operand.vmem [shape: f32[1,32], index: 4, kind: input, shape index: {}]   ;;  %s247_s2 = inlined_call_operand.vmem [shape: f32[1,128], index: 2, kind: input, shape index: {}]   ;;  %s248_s1 = inlined_call_operand.vmem [shape: bf16[32,128], index: 1, kind: input, shape index: {}]   ;;  %s249_s5 = inlined_call_operand.vmem [shape: bf16[1,16,128], index: 5, kind: output, shape index: {}]  }
   0x1   :  { %v165_v0 = vld [vmem:[%s244_s0] sm:$0xff]   ;;  %177 = vrcp.f32 %v187_v5  ;;  %v163_v22 = vld [vmem:[%s248_s1 + $0x8] sm:$0xff] }
   0x2   :  { %v166_v1 = vunpack.c.l.bf16 %v165_v0  ;;  %v167_v3 = vunpack.c.h.bf16 %v165_v0  ;;  %119 = vmatpush.bf16.msra.mxu0 %v163_v22  ;;  %v162_v24 = vld [vmem:[%s248_s1] sm:$0xff] }
   0x3   :  { %v174_v43 = vld [vmem:[%s245_s3] ss:$0 sm:$0xff] }
   0x4   :  { %v26_v2 = vsel %vm25_vm0, %v166_v1, 0.0  ;;  %v29_v4 = vsel %vm25_vm0, %v167_v3, 0.0  ;;  %v175_v48 = vld [vmem:[%s246_s4] ss:$0 sm:$0xff] }
   0x5   :  { %27 = vadd.xlane.f32.xlu0 %v26_v2  ;;  %v176_v53 = vld [vmem:[%s247_s2] ss:$0 sm:$0xff] }
   0x6   :  { %120 = vmatpush.bf16.msra.mxu0 %v162_v24 }
   0x7   :  { %v178_v6 = vpop.eup %177 }
   0x8   :  { %v33_v7 = vmul.f32 32.0, %v178_v6  ;;  %vm37_vm1 = vweird.f32 %v178_v6 }
   0xa   :  { %v34_v8 = vsub.f32 1.0, %v33_v7 }
   0xc   :  { %v35_v9 = vmul.f32 %v178_v6, %v34_v8 }
   0xd   :  { %30 = vadd.xlane.f32.xlu0 %v29_v4 }
   0xe   :  { %v36_v10 = vadd.f32 %v178_v6, %v35_v9 }
  0x10   :  { %v38_v11 = vsel %vm37_vm1, %v178_v6, %v36_v10 }
  0x78   :  { %v28_v12 = vpop.xlane.xlu0 %27 }
  0x79   :  { %v39_v13 = vmul.f32 %v38_v11, %v28_v12 }
  0x7b   :  { %v41_v14 = vsub.f32 %v166_v1, %v39_v13 }
  0x7d   :  { %v43_v15 = vmul.f32 %v41_v14, %v41_v14 }
  0x7f   :  { %v45_v16 = vsel %vm25_vm0, %v43_v15, 0.0 }
  0x80   :  { %46 = vadd.xlane.f32.xlu1 %v45_v16  ;;  %v31_v17 = vpop.xlane.xlu0 %30 }
  0x81   :  { %v40_v18 = vmul.f32 %v38_v11, %v31_v17 }
  0x83   :  { %v42_v19 = vsub.f32 %v167_v3, %v40_v18 }
  0x85   :  { %v44_v20 = vmul.f32 %v42_v19, %v42_v19 }
  0x87   :  { %v48_v21 = vsel %vm25_vm0, %v44_v20, 0.0 }
  0x88   :  { %49 = vadd.xlane.f32.xlu1 %v48_v21 }
  0xf3   :  { %v47_v23 = vpop.xlane.xlu1 %46 }
  0xf4   :  { %v51_v25 = vmul.f32 %v47_v23, %v38_v11 }
  0xf6   :  { %v53_v26 = vadd.f32 1e-05, %v51_v25 }
  0xf8   :  { %179 = vrsqrt.f32 %v53_v26  ;;  %vm61_vm3 = vweird.f32 %v53_v26 }
  0xfb   :  { %v50_v27 = vpop.xlane.xlu1 %49 }
  0xfc   :  { %v52_v28 = vmul.f32 %v50_v27, %v38_v11 }
  0xfe   :  { %v180_v29 = vpop.eup %179  ;;  %v54_v30 = vadd.f32 1e-05, %v52_v28 }
  0xff   :  { %v56_v31 = vmul.f32 %v180_v29, %v53_v26  ;;  %vm62_vm2 = vweird.f32 %v180_v29 }
 0x100   :  { %181 = vrsqrt.f32 %v54_v30  ;;  %vm63_vm4 = vmor %vm61_vm3, %vm62_vm2  ;;  %vm71_vm6 = vweird.f32 %v54_v30 }
 0x101   :  { %v57_v32 = vmul.f32 %v180_v29, %v56_v31 }
 0x103   :  { %v58_v33 = vmul.f32 0.5, %v57_v32 }
 0x105   :  { %v59_v34 = vsub.f32 1.5, %v58_v33 }
 0x106   :  { %v182_v35 = vpop.eup %181 }
 0x107   :  { %v60_v36 = vmul.f32 %v180_v29, %v59_v34  ;;  %v66_v37 = vmul.f32 %v182_v35, %v54_v30  ;;  %vm72_vm5 = vweird.f32 %v182_v35 }
 0x108   :  { %vm73_vm7 = vmor %vm71_vm6, %vm72_vm5 }
 0x109   :  { %v67_v38 = vmul.f32 %v182_v35, %v66_v37  ;;  %v64_v39 = vsel %vm63_vm4, %v180_v29, %v60_v36 }
 0x10a   :  { %v75_v42 = vmul.f32 %v64_v39, %v41_v14 }
 0x10b   :  { %v68_v40 = vmul.f32 0.5, %v67_v38 }
 0x10c   :  { %v81_v47 = vmul.f32 %v174_v43, %v75_v42 }
 0x10d   :  { %v69_v41 = vsub.f32 1.5, %v68_v40 }
 0x10e   :  { %v87_v50 = vadd.f32 %v175_v48, %v81_v47 }
 0x10f   :  { %v70_v44 = vmul.f32 %v182_v35, %v69_v41 }
 0x111   :  { %v74_v45 = vsel %vm73_vm7, %v182_v35, %v70_v44 }
 0x112   :  { %v76_v46 = vmul.f32 %v74_v45, %v42_v19 }
 0x114   :  { %v82_v49 = vmul.f32 %v174_v43, %v76_v46 }
 0x116   :  { %v88_v51 = vadd.f32 %v175_v48, %v82_v49 }
 0x118   :  { %v89_v52 = vpack.c.bf16 %v88_v51, %v87_v50 }
 0x11a   :  { %161 = vmatmul.msk.bf16.vlgmr.msra.gmra.mxu0 %vm25_vm0, %v89_v52 }
 0x197   :  { %v122_v54 = vpop.f32.mrf.mxu0 }
 0x198   :  { %v123_v55 = vadd.f32 %v176_v53, %v122_v54 }
 0x19a   :  { %v129_v56 = vmul.f32 0.044715, %v123_v55  ;;  %v127_v7 = vmul.f32 0.5, %v123_v55 }
 0x19c   :  { %v131_v57 = vmul.f32 %v129_v56, %v123_v55 }
 0x19e   :  { %v133_v58 = vmul.f32 %v131_v57, %v123_v55 }
 0x19f   :  { %v124_v59 = vpop.f32.mrf.mxu0 }
 0x1a0   :  { %v135_v60 = vadd.f32 %v133_v58, %v123_v55  ;;  %v125_v61 = vadd.f32 %v176_v53, %v124_v59 }
 0x1a2   :  { %v130_v62 = vmul.f32 0.044715, %v125_v61  ;;  %v137_v63 = vmul.f32 0.7978846, %v135_v60  ;;  %v128_v8 = vmul.f32 0.5, %v125_v61 }
 0x1a4   :  { %v132_v0 = vmul.f32 %v130_v62, %v125_v61  ;;  %183 = vtanh.f32 %v137_v63 }
 0x1a6   :  { %v134_v1 = vmul.f32 %v132_v0, %v125_v61 }
 0x1a8   :  { %v136_v2 = vadd.f32 %v134_v1, %v125_v61 }
 0x1aa   :  { %v138_v3 = vmul.f32 0.7978846, %v136_v2  ;;  %v184_v4 = vpop.eup %183 }
 0x1ab   :  { %v141_v5 = vadd.f32 1.0, %v184_v4 }
 0x1ac   :  { %185 = vtanh.f32 %v138_v3 }
 0x1ad   :  { %v143_v10 = vmul.f32 %v141_v5, %v127_v7 }
 0x1b2   :  { %v186_v6 = vpop.eup %185 }
 0x1b3   :  { %v142_v9 = vadd.f32 1.0, %v186_v6 }
 0x1b5   :  { %v144_v11 = vmul.f32 %v142_v9, %v128_v8 }
 0x1b7   :  { %v171_v12 = vpack.c.bf16 %v144_v11, %v143_v10 }
 0x1b9   :  { %172 = vst [vmem:[%s249_s5] sm:$0xff] %v171_v12  }

// kernel: audio_encoder_forward.19
= control target key start
LH: loop header
LB: loop body
LE: loop exit
PB: predicated region body
PF: predicated region fallthrough
CT: control target
= control target key end

     0   :  { %vm115_vm0 = vcmask 257024   ;;  %s236_s1 = inlined_call_operand.vmem [shape: bf16[128,32], index: 1, kind: input, shape index: {}]   ;;  %s237_s2 = inlined_call_operand.vmem [shape: f32[1,32], index: 2, kind: input, shape index: {}]   ;;  %s238_s0 = inlined_call_operand.vmem [shape: bf16[1,16,128], index: 0, kind: input, shape index: {}]   ;;  %s239_s3 = inlined_call_operand.vmem [shape: bf16[1,16,32], index: 3, kind: input, shape index: {}]   ;;  %s240_s4 = inlined_call_operand.vmem [shape: bf16[1,16,32], index: 4, kind: output, shape index: {}]  }
   0x1   :  { %v166_v0 = vld [vmem:[%s236_s1 + $0x38] sm:$0xff]  ;;  %v165_v1 = vld [vmem:[%s236_s1 + $0x30] sm:$0xff]  ;;  %v164_v2 = vld [vmem:[%s236_s1 + $0x28] sm:$0xff] }
   0x2   :  { %93 = vmatpush.bf16.msra.mxu0 %v166_v0  ;;  %v163_v3 = vld [vmem:[%s236_s1 + $0x20] sm:$0xff]  ;;  %v162_v4 = vld [vmem:[%s236_s1 + $0x18] sm:$0xff]  ;;  %v161_v5 = vld [vmem:[%s236_s1 + $0x10] sm:$0xff] }
   0x3   :  { %v160_v6 = vld [vmem:[%s236_s1 + $0x8] sm:$0xff]  ;;  %v159_v7 = vld [vmem:[%s236_s1] sm:$0xff] }
   0x4   :  { %v158_v8 = vld [vmem:[%s238_s0] sm:$0xff] }
   0x5   :  { %v168_v9 = vld [vmem:[%s239_s3] sm:$0xff]  }
   0x6   :  { %94 = vmatpush.bf16.msra.mxu0 %v165_v1  ;;  %v171_v10 = vld [vmem:[%s237_s2] ss:$0 sm:$0xff]  ;;  %v169_v11 = vunpack.c.l.bf16 %v168_v9  ;;  %v170_v16 = vunpack.c.h.bf16 %v168_v9 }
   0xa   :  { %95 = vmatpush.bf16.msra.mxu0 %v164_v2 }
   0xe   :  { %96 = vmatpush.bf16.msra.mxu0 %v163_v3 }
  0x12   :  { %97 = vmatpush.bf16.msra.mxu0 %v162_v4 }
  0x16   :  { %98 = vmatpush.bf16.msra.mxu0 %v161_v5 }
  0x1a   :  { %99 = vmatpush.bf16.msra.mxu0 %v160_v6 }
  0x1e   :  { %100 = vmatpush.bf16.msra.mxu0 %v159_v7 }
  0x21   :  { %101 = vmatmul.bf16.vlgmr.msra.gmra.mxu0 %v158_v8 }
  0x9e   :  { %v102_v12 = vpop.f32.mrf.mxu0 }
  0x9f   :  { %v103_v13 = vadd.f32 %v171_v10, %v102_v12 }
  0xa1   :  { %v111_v14 = vadd.f32 %v169_v11, %v103_v13 }
  0xa3   :  { %v113_v15 = vpack.c.bf16 %v111_v14, %v111_v14 }
  0xa5   :  { %116 = vst.msk [vmem:[%s240_s4] sm:$0xf] %vm115_vm0, %v113_v15 }
  0xa6   :  { %v104_v17 = vpop.f32.mrf.mxu0 }
  0xa7   :  { %v105_v18 = vadd.f32 %v171_v10, %v104_v17 }
  0xa9   :  { %v112_v19 = vadd.f32 %v170_v16, %v105_v18 }
  0xab   :  { %v114_v20 = vpack.c.bf16 %v112_v19, %v112_v19 }
  0xad   :  { %117 = vst.msk [vmem:[%s240_s4 + $0x4] sm:$0xf] %vm115_vm0, %v114_v20 }

// kernel: audio_encoder_forward.16
= control target key start
LH: loop header
LB: loop body
LE: loop exit
PB: predicated region body
PF: predicated region fallthrough
CT: control target
= control target key end

     0   :  { %s1376_s12 = smov 0   ;;  %s1378_s13 = smov 0   ;;  %s1652_s0 = inlined_call_operand.vmem [shape: bf16[2,8,32], index: 0, kind: input, shape index: {}]   ;;  %s1653_s1 = inlined_call_operand.vmem [shape: bf16[2,8,32], index: 1, kind: input, shape index: {}]   ;;  %s1654_s2 = inlined_call_operand.vmem [shape: bf16[2,8,32], index: 2, kind: input, shape index: {}]   ;;  %s1655_s3 = inlined_call_operand.vmem [shape: bf16[2,8,32], index: 3, kind: output, shape index: {}]  }
   0x1   :  { %s1380_s14 = smov 0  }
   0x2 LB: > { %s32_s15 = sadd.s32 1, %s1339_s13  ;;  %p1244_p0 = scmp.ge.s32.totalorder %s1343_s14, 1  ;;  %s1343_s14 = sphi %s1380_s14, %s13_s14   ;;  %s1339_s13 = sphi %s1378_s13, %s1657_s13   ;;  %s1335_s12 = sphi %s1376_s12, %s1656_s12  }
   0x3   : > { %p34_p1 = scmp.ge.s32.totalorder %s32_s15, 2  ;;  %p190_p2 = scmp.lt.s32.totalorder %s1343_s14, 3 }
   0x5   : > { %s1659_s15 = smov (%p34_p1, %s32_s15), 0  ;;  %p191_p3 = pnand %p1244_p0, %p190_p2 }
   0x6   : > { %p232_p4 = scmp.lt.s32.totalorder (!%p191_p3), %s1335_s12, 1  ;;  %s1345_s23 = smov (!%p191_p3), 104  }
   0x7   : > { %194 = sbr.rel (%p191_p3) target bundleno = 964 (0x3c4), region = 32  ;;  %s1346_s24 = smov (!%p191_p3), 120  }
   0x8   : > { %s1347_s25 = smov (!%p191_p3), 112   ;;  %s1353_s29 = smov (!%p191_p3), 24  }
   0x9   : > { %s1354_s30 = smov (!%p191_p3), 16   ;;  %s1355_s4 = smov (!%p191_p3), 8  }
   0xc   : > { %s1661_s12 = smov (!%p232_p4, %s1335_s12), 1  ;;  %v1348_v5 = vmov 1983009808   ;;  %v1349_v19 = vmov 1934713408   ;;  %vm310_vm0 = vcmask 1047556  }
   0xd   : > { %s1394_s16 = sshll.u32 %s1661_s12, 2  ;;  %v301_v6 = vunpack.c.l.s4 %v1348_v5  ;;  %v315_v20 = vunpack.c.l.s4 %v1349_v19  ;;  %vm274_vm1 = vcmask 64512   ;;  %vm418_vm2 = vcmask 60416  }
   0xe   : > { %s238_s19 = scalar_lea.vmem %s1652_s0, %s1394_s16  ;;  %s245_s22 = scalar_lea.vmem %s1653_s1, %s1394_s16  ;;  %vm265_vm3 = vcmask 7168   ;;  %vm877_vm4 = vcmask 1043456   ;;  %vm1126_vm5 = vcmask 130048   ;;  %vm1128_vm6 = vcmask 195584  }
   0xf   : > { %v279_v0 = vld [vmem:[%s238_s19] sm:$0xf]  ;;  %v1410_v11 = vunpack.c.0.s8 %v301_v6  ;;  %v1416_v33 = vunpack.c.0.s8 %v315_v20  ;;  %s252_s28 = scalar_lea.vmem %s1654_s2, %s1394_s16  ;;  %s259_s7 = scalar_lea.vmem %s1655_s3, %s1394_s16  ;;  %vm1131_vm7 = vcmask 257024  }
  0x10   : > { %285 = vrot.lane.b32.xlu1 %v279_v0, %s1345_s23  ;;  %281 = vrot.lane.b32.xlu0 %v279_v0, %s1346_s24  ;;  %v423_v1 = vld [vmem:[%s245_s22] sm:$0xf]  ;;  %v290_v12 = vshrl.u32 %v279_v0, 16 }
  0x11   : > { %427 = vrot.lane.b32.xlu2 %v423_v1, %s1347_s25  ;;  %v434_v21 = vshrl.u32 %v423_v1, 16 }
  0x18   : > { %425 = vrot.lane.b32.xlu1 %v423_v1, %s1346_s24  ;;  %283 = vrot.lane.b32.xlu0 %v279_v0, %s1347_s25 }
  0x19   : > { %429 = vrot.lane.b32.xlu2 %v423_v1, %s1345_s23 }
  0x6b   : > { %v428_v2 = vpop.permute.xlu2 %427 }
  0x6c   : > { %v440_v4 = vshrl.u32 %v428_v2, 16 }
  0x73   : > { %v430_v3 = vpop.permute.xlu2 %429 }
  0x74   : > { %v441_v7 = vshrl.u32 %v430_v3, 16  ;;  %v439_v10 = vpack.i.b16 %v430_v3, %v428_v2 }
  0x76   : > { %v442_v14 = vpack.i.b16 %v441_v7, %v440_v4  ;;  %v452_v16 = vperm.slane %v439_v10, %v1410_v11 }
  0x78   : > { %v479_v18 = vperm.slane %v442_v14, %v1410_v11  ;;  %v453_v24 = vrot.slane %v452_v16, 4 }
  0x7a   : > { %v480_v32 = vrot.slane %v479_v18, 4 }
  0x82   : > { %v286_v8 = vpop.permute.xlu1 %285  ;;  %v282_v9 = vpop.permute.xlu0 %281 }
  0x83   : > { %v291_v13 = vshrl.u32 %v282_v9, 16  ;;  %v289_v15 = vpack.i.b16 %v282_v9, %v279_v0  ;;  %v297_v22 = vshrl.u32 %v286_v8, 16 }
  0x85   : > { %v292_v17 = vpack.i.b16 %v291_v13, %v290_v12  ;;  %v303_v23 = vperm.slane %v289_v15, %v1410_v11 }
  0x87   : > { %v330_v31 = vperm.slane %v292_v17, %v1410_v11  ;;  %v312_v38 = vrot.slane %v303_v23, 4 }
  0x89   : > { %v338_v43 = vrot.slane %v330_v31, 4 }
  0x8a   : > { %v426_v25 = vpop.permute.xlu1 %425  ;;  %v284_v26 = vpop.permute.xlu0 %283 }
  0x8b   : > { %v433_v27 = vpack.i.b16 %v426_v25, %v423_v1  ;;  %v435_v28 = vshrl.u32 %v426_v25, 16  ;;  %v295_v29 = vpack.i.b16 %v286_v8, %v284_v26  ;;  %v296_v30 = vshrl.u32 %v284_v26, 16 }
  0x8d   : > { %v436_v34 = vpack.i.b16 %v435_v28, %v434_v21  ;;  %v447_v35 = vperm.slane %v433_v27, %v1410_v11  ;;  %v298_v36 = vpack.i.b16 %v297_v22, %v296_v30  ;;  %v308_v37 = vperm.slane %v295_v29, %v1410_v11 }
  0x8f   : > { %v455_v39 = vsel %vm310_vm0, %v453_v24, %v447_v35  ;;  %v456_v40 = vrot.slane %v447_v35, 4  ;;  %v474_v41 = vperm.slane %v436_v34, %v1410_v11  ;;  %v309_v42 = vrot.slane %v308_v37, 4 }
  0x90   : > { %v461_v44 = vperm.slane %v455_v39, %v1416_v33  ;;  %v313_v45 = vsel %vm310_vm0, %v308_v37, %v312_v38  ;;  %v335_v46 = vperm.slane %v298_v36, %v1410_v11 }
  0x91   : > { %v457_v47 = vsel %vm310_vm0, %v452_v16, %v456_v40  ;;  %v481_v48 = vsel %vm310_vm0, %v480_v32, %v474_v41  ;;  %v482_v49 = vrot.slane %v474_v41, 4  ;;  %v311_v50 = vsel %vm310_vm0, %v309_v42, %v303_v23  ;;  %v1448_v16 = vld [vmem:[%s252_s28] sm:$0xf] }
  0x92   : > { %v465_v51 = vperm.slane %v457_v47, %v1416_v33  ;;  %v487_v52 = vperm.slane %v481_v48, %v1416_v33  ;;  %v317_v53 = vperm.slane %v311_v50, %v1416_v33  ;;  %v321_v55 = vperm.slane %v313_v45, %v1416_v33  ;;  %548 = vrot.lane.b32.xlu0 %v1448_v16, %s1346_s24 }
  0x93   : > { %v483_v54 = vsel %vm310_vm0, %v479_v18, %v482_v49  ;;  %v336_v56 = vrot.slane %v335_v46, 4  ;;  %v339_v57 = vsel %vm310_vm0, %v335_v46, %v338_v43  ;;  %v466_v58 = vrot.slane %v461_v44, 4  ;;  %550 = vrot.lane.b32.xlu1 %v1448_v16, %s1347_s25  ;;  %552 = vrot.lane.b32.xlu2 %v1448_v16, %s1345_s23 }
  0x94   : > { %v468_v59 = vrot.slane %v465_v51, 4  ;;  %v491_v60 = vperm.slane %v483_v54, %v1416_v33  ;;  %v322_v61 = vrot.slane %v317_v53, 4  ;;  %v324_v62 = vrot.slane %v321_v55, 4 }
  0x95   : > { %v337_v63 = vsel %vm310_vm0, %v336_v56, %v330_v31  ;;  %v347_v0 = vperm.slane %v339_v57, %v1416_v33  ;;  %v492_v2 = vrot.slane %v487_v52, 4  ;;  %v467_v17 = vsel %vm310_vm0, 0, %v466_v58 }
  0x96   : > { %v469_v1 = vsel %vm310_vm0, 0, %v468_v59  ;;  %v494_v3 = vrot.slane %v491_v60, 4  ;;  %v343_v4 = vperm.slane %v337_v63, %v1416_v33  ;;  %v323_v6 = vsel %vm310_vm0, 0, %v322_v61 }
  0x97   : > { %v501_v5 = vrot.slane %v469_v1, 4  ;;  %v325_v7 = vsel %vm310_vm0, 0, %v324_v62  ;;  %v350_v8 = vrot.slane %v347_v0, 4  ;;  %v352_v15 = vsel %vm310_vm0, %v324_v62, %v317_v53 }
  0x98   : > { %v495_v9 = vsel %vm310_vm0, 0, %v494_v3  ;;  %v348_v10 = vrot.slane %v343_v4, 4  ;;  %v357_v12 = vrot.slane %v325_v7, 4  ;;  %v493_v21 = vsel %vm310_vm0, 0, %v492_v2 }
  0x99   : > { %v520_v13 = vrot.slane %v495_v9, 4  ;;  %v351_v14 = vsel %vm310_vm0, 0, %v350_v8  ;;  %v496_v23 = vsel %vm310_vm0, %v468_v59, %v461_v44  ;;  %v502_v24 = vsel %vm310_vm0, %v501_v5, %v467_v17 }
  0x9a   : > { %v349_v18 = vsel %vm310_vm0, 0, %v348_v10  ;;  %v358_v19 = vsel %vm310_vm0, %v357_v12, %v323_v6  ;;  %v376_v20 = vrot.slane %v351_v14, 4  ;;  %v356_v25 = vperm.slane %v352_v15, %v1410_v11 }
  0x9b   : > { %v362_v22 = vperm.slane %v358_v19, %v1410_v11  ;;  %v371_v26 = vsel %vm310_vm0, %v350_v8, %v343_v4  ;;  %v506_v28 = vperm.slane %v502_v24, %v1410_v11  ;;  %v515_v31 = vsel %vm310_vm0, %v494_v3, %v487_v52 }
  0x9c   : > { %v377_v27 = vsel %vm310_vm0, %v376_v20, %v349_v18  ;;  %v521_v32 = vsel %vm310_vm0, %v520_v13, %v493_v21  ;;  %v500_v34 = vperm.slane %v496_v23, %v1410_v11  ;;  %v375_v38 = vperm.slane %v371_v26, %v1410_v11 }
  0x9d   : > { %v363_v29 = vrot.slane %v362_v22, 4  ;;  %v381_v30 = vperm.slane %v377_v27, %v1410_v11  ;;  %v507_v35 = vrot.slane %v506_v28, 4  ;;  %v525_v36 = vperm.slane %v521_v32, %v1410_v11 }
  0x9e   : > { %v519_v42 = vperm.slane %v515_v31, %v1410_v11  ;;  %v557_v31 = vshrl.u32 %v1448_v16, 16 }
  0x9f   : > { %v364_v37 = vsel %vm310_vm0, %v363_v29, %v356_v25  ;;  %v382_v39 = vrot.slane %v381_v30, 4  ;;  %v508_v41 = vsel %vm310_vm0, %v507_v35, %v500_v34  ;;  %v526_v43 = vrot.slane %v525_v36, 4 }
  0xa0   : > { %v368_v40 = vperm.slane %v364_v37, %v1416_v33  ;;  %v512_v45 = vperm.slane %v508_v41, %v1416_v33 }
  0xa1   : > { %v383_v44 = vsel %vm310_vm0, %v382_v39, %v375_v38  ;;  %v527_v48 = vsel %vm310_vm0, %v526_v43, %v519_v42  ;;  %v1350_v43 = vmov -inf  }
  0xa2   : > { %v369_v46 = vrot.slane %v368_v40, 4  ;;  %v387_v47 = vperm.slane %v383_v44, %v1416_v33  ;;  %v394_v49 = vshrl.u32 %v368_v40, 16  ;;  %v531_v50 = vperm.slane %v527_v48, %v1416_v33  ;;  %266 = vst.msk [vmem:[#allocation3] sm:$0xff] %vm265_vm3, %v1350_v43 }
  0xa3   : > { %v537_v51 = vshrl.u32 %v512_v45, 16  ;;  %v513_v52 = vrot.slane %v512_v45, 4  ;;  %267 = vst.msk [vmem:[#allocation3 + $0x8] sm:$0xff] %vm265_vm3, %v1350_v43 }
  0xa4   : > { %v370_v53 = vsel %vm310_vm0, 0, %v369_v46  ;;  %v388_v54 = vrot.slane %v387_v47, 4  ;;  %v392_v55 = vpack.i.b16 %v387_v47, %v368_v40  ;;  %v395_v56 = vshrl.u32 %v387_v47, 16  ;;  %268 = vst.msk [vmem:[#allocation3 + $0x10] sm:$0xff] %vm265_vm3, %v1350_v43 }
  0xa5   : > { %v402_v57 = vshrl.u32 %v370_v53, 16  ;;  %v536_v58 = vpack.i.b16 %v531_v50, %v512_v45  ;;  %v538_v59 = vshrl.u32 %v531_v50, 16  ;;  %v514_v60 = vsel %vm310_vm0, 0, %v513_v52  ;;  %269 = vst.msk [vmem:[#allocation3 + $0x18] sm:$0xff] %vm265_vm3, %v1350_v43 }
  0xa6   : > { %v389_v61 = vsel %vm310_vm0, 0, %v388_v54  ;;  %v396_v62 = vpack.i.b16 %v395_v56, %v394_v49  ;;  %v406_v63 = vunpack.c.l.bf16 %v392_v55  ;;  %v532_v0 = vrot.slane %v531_v50, 4 }
  0xa7   : > { %v400_v1 = vpack.i.b16 %v389_v61, %v370_v53  ;;  %v403_v2 = vshrl.u32 %v389_v61, 16  ;;  %v677_v3 = vsel %vm274_vm1, %v536_v58, 0  ;;  %v539_v4 = vpack.i.b16 %v538_v59, %v537_v51 }
  0xa8   : > { %v407_v5 = vunpack.c.l.bf16 %v396_v62  ;;  %v410_v6 = vmul.f32 0.35355338, %v406_v63  ;;  %686 = vmatpush.bf16.xpose.msra.mxu0 %v677_v3  ;;  %v533_v7 = vsel %vm310_vm0, 0, %v532_v0  ;;  %v543_v15 = vshrl.u32 %v514_v60, 16 }
  0xa9   : > { %v404_v8 = vpack.i.b16 %v403_v2, %v402_v57  ;;  %v408_v9 = vunpack.c.l.bf16 %v400_v1  ;;  %v696_v10 = vsel %vm274_vm1, %v539_v4, 0  ;;  %v542_v12 = vpack.i.b16 %v533_v7, %v514_v60 }
  0xaa   : > { %v411_v13 = vmul.f32 0.35355338, %v407_v5  ;;  %v414_v14 = vpack.c.bf16 %v410_v6, %v410_v6  ;;  %705 = vmatpush.bf16.xpose.msra.mxu1 %v696_v10  ;;  %v544_v17 = vshrl.u32 %v533_v7, 16 }
  0xab   : > { %v409_v18 = vunpack.c.l.bf16 %v404_v8  ;;  %v412_v19 = vmul.f32 0.35355338, %v408_v9  ;;  %v715_v20 = vsel %vm274_vm1, %v542_v12, 0 }
  0xac   : > { %v415_v21 = vpack.c.bf16 %v411_v13, %v411_v13  ;;  %419 = vst.msk [vmem:[#allocation2] sm:$0xf] %vm418_vm2, %v414_v14  ;;  %724 = vmatpush.bf16.xpose.msra.mxu2 %v715_v20  ;;  %v545_v22 = vpack.i.b16 %v544_v17, %v543_v15 }
  0xad   : > { %v413_v23 = vmul.f32 0.35355338, %v409_v18  ;;  %v416_v24 = vpack.c.bf16 %v412_v19, %v412_v19 }
  0xae   : > { %420 = vst.msk [vmem:[#allocation2 + $0x4] sm:$0xf] %vm418_vm2, %v415_v21  ;;  %v734_v25 = vsel %vm274_vm1, %v545_v22, 0 }
  0xaf   : > { %v417_v26 = vpack.c.bf16 %v413_v23, %v413_v23  ;;  %421 = vst.msk [vmem:[#allocation2 + $0x8] sm:$0xf] %vm418_vm2, %v416_v24  ;;  %743 = vmatpush.bf16.xpose.msra.mxu3 %v734_v25 }
  0xb1   : > { %422 = vst.msk [vmem:[#allocation2 + $0xc] sm:$0xf] %vm418_vm2, %v417_v26 }
  0xb3   : > { %v668_v27 = vld [vmem:[#allocation2] sm:$0xf] }
  0xb4   : > { %1249 = vmatmul.msk.bf16.vlgmr.msra.gmra.mxu0 %vm274_vm1, %v668_v27 }
  0xb5   : > { %v669_v28 = vld [vmem:[#allocation2 + $0x4] sm:$0xf] }
  0xb6   : > { %1250 = vmatmul.msk.bf16.vlgmr.msra.gmra.mxu1 %vm274_vm1, %v669_v28  ;;  %v670_v29 = vld [vmem:[#allocation2 + $0x8] sm:$0xf] }
  0xb7   : > { %1251 = vmatmul.msk.bf16.vlgmr.msra.gmra.mxu2 %vm274_vm1, %v670_v29 }
  0xb8   : > { %v671_v30 = vld [vmem:[#allocation2 + $0xc] sm:$0xf] }
  0xb9   : > { %1252 = vmatmul.msk.bf16.vlgmr.msra.gmra.mxu3 %vm274_vm1, %v671_v30 }
  0xed   : > { %v553_v34 = vpop.permute.xlu2 %552 }
  0xee   : > { %v564_v37 = vshrl.u32 %v553_v34, 16 }
 0x104   : > { %v549_v32 = vpop.permute.xlu0 %548 }
 0x105   : > { %v556_v35 = vpack.i.b16 %v549_v32, %v1448_v16  ;;  %v558_v36 = vshrl.u32 %v549_v32, 16  ;;  %v551_v38 = vpop.permute.xlu1 %550 }
 0x106   : > { %v562_v39 = vpack.i.b16 %v553_v34, %v551_v38  ;;  %v563_v40 = vshrl.u32 %v551_v38, 16 }
 0x107   : > { %v559_v41 = vpack.i.b16 %v558_v36, %v557_v31  ;;  %v570_v42 = vperm.slane %v556_v35, %v1410_v11 }
 0x108   : > { %v565_v44 = vpack.i.b16 %v564_v37, %v563_v40  ;;  %v575_v45 = vperm.slane %v562_v39, %v1410_v11 }
 0x109   : > { %v578_v46 = vrot.slane %v570_v42, 4  ;;  %v596_v16 = vperm.slane %v559_v41, %v1410_v11 }
 0x10a   : > { %v576_v47 = vrot.slane %v575_v45, 4  ;;  %v601_v48 = vperm.slane %v565_v44, %v1410_v11 }
 0x10b   : > { %v604_v49 = vrot.slane %v596_v16, 4  ;;  %v579_v50 = vsel %vm310_vm0, %v575_v45, %v578_v46 }
 0x10c   : > { %v577_v51 = vsel %vm310_vm0, %v576_v47, %v570_v42  ;;  %v587_v52 = vperm.slane %v579_v50, %v1416_v33  ;;  %v602_v53 = vrot.slane %v601_v48, 4  ;;  %v1352_v50 = vmov 0.0  }
 0x10d   : > { %v583_v54 = vperm.slane %v577_v51, %v1416_v33  ;;  %v605_v55 = vsel %vm310_vm0, %v601_v48, %v604_v49  ;;  %v1351_v49 = vmov 0   ;;  %270 = vst.msk [vmem:[#allocation4] sm:$0xff] %vm265_vm3, %v1352_v50  ;;  %v1562_v51 = vld [vmem:[#allocation3] sm:$0xff] }
 0x10e   : > { %v590_v56 = vrot.slane %v587_v52, 4  ;;  %v603_v57 = vsel %vm310_vm0, %v602_v53, %v596_v16  ;;  %v613_v58 = vperm.slane %v605_v55, %v1416_v33  ;;  %1295 = vset.pattern.permute.xlu2 %v1351_v49  ;;  %1294 = vset.pattern.permute.xlu0 %v1351_v49  ;;  %271 = vst.msk [vmem:[#allocation4 + $0x8] sm:$0xff] %vm265_vm3, %v1352_v50  ;;  %v750_v55 = vld [vmem:[#allocation3 + $0x8] sm:$0xff] }
 0x10f   : > { %v588_v59 = vrot.slane %v583_v54, 4  ;;  %v609_v60 = vperm.slane %v603_v57, %v1416_v33  ;;  %1296 = vset.pattern.permute.xlu1 %v1351_v49  ;;  %272 = vst.msk [vmem:[#allocation4 + $0x10] sm:$0xff] %vm265_vm3, %v1352_v50 }
 0x110   : > { %v591_v61 = vsel %vm310_vm0, 0, %v590_v56  ;;  %v616_v62 = vrot.slane %v613_v58, 4  ;;  %v618_v3 = vsel %vm310_vm0, %v590_v56, %v583_v54  ;;  %273 = vst.msk [vmem:[#allocation4 + $0x18] sm:$0xff] %vm265_vm3, %v1352_v50  ;;  %v751_v56 = vld [vmem:[#allocation3 + $0x10] sm:$0xff] }
 0x111   : > { %v589_v0 = vsel %vm310_vm0, 0, %v588_v59  ;;  %v614_v1 = vrot.slane %v609_v60, 4  ;;  %v623_v2 = vrot.slane %v591_v61, 4  ;;  %v622_v12 = vperm.slane %v618_v3, %v1410_v11  ;;  %275 = vst.msk [vmem:[#allocation5] sm:$0xff] %vm274_vm1, %v1352_v50 }
 0x112   : > { %v617_v5 = vsel %vm310_vm0, 0, %v616_v62  ;;  %v637_v10 = vsel %vm310_vm0, %v616_v62, %v609_v60  ;;  %276 = vst.msk [vmem:[#allocation5 + $0x8] sm:$0xff] %vm274_vm1, %v1352_v50  ;;  %v752_v60 = vld [vmem:[#allocation3 + $0x18] sm:$0xff] }
 0x113   : > { %v642_v7 = vrot.slane %v617_v5, 4  ;;  %v615_v8 = vsel %vm310_vm0, 0, %v614_v1  ;;  %v624_v9 = vsel %vm310_vm0, %v623_v2, %v589_v0  ;;  %v641_v17 = vperm.slane %v637_v10, %v1410_v11  ;;  %277 = vst.msk [vmem:[#allocation5 + $0x10] sm:$0xff] %vm274_vm1, %v1352_v50 }
 0x114   : > { %v628_v13 = vperm.slane %v624_v9, %v1410_v11  ;;  %278 = vst.msk [vmem:[#allocation5 + $0x18] sm:$0xff] %vm274_vm1, %v1352_v50 }
 0x115   : > { %v643_v14 = vsel %vm310_vm0, %v642_v7, %v615_v8 }
 0x116   : > { %v629_v15 = vrot.slane %v628_v13, 4  ;;  %v647_v18 = vperm.slane %v643_v14, %v1410_v11 }
 0x118   : > { %v630_v19 = vsel %vm310_vm0, %v629_v15, %v622_v12  ;;  %v648_v20 = vrot.slane %v647_v18, 4 }
 0x119   : > { %v634_v22 = vperm.slane %v630_v19, %v1416_v33 }
 0x11a   : > { %v649_v25 = vsel %vm310_vm0, %v648_v20, %v641_v17 }
 0x11b   : > { %v653_v28 = vperm.slane %v649_v25, %v1416_v33  ;;  %v659_v29 = vshrl.u32 %v634_v22, 16  ;;  %v635_v30 = vrot.slane %v634_v22, 4 }
 0x11d   : > { %v658_v34 = vpack.i.b16 %v653_v28, %v634_v22  ;;  %v660_v35 = vshrl.u32 %v653_v28, 16  ;;  %v636_v36 = vsel %vm310_vm0, 0, %v635_v30  ;;  %v654_v37 = vrot.slane %v653_v28, 4 }
 0x11e   : > { %v665_v40 = vshrl.u32 %v636_v36, 16 }
 0x11f   : > { %v879_v38 = vsel %vm877_vm4, %v658_v34, 0  ;;  %v661_v39 = vpack.i.b16 %v660_v35, %v659_v29  ;;  %v655_v41 = vsel %vm310_vm0, 0, %v654_v37 }
 0x120   : > { %888 = vmatpush.bf16.msrb.mxu0 %v879_v38  ;;  %v664_v43 = vpack.i.b16 %v655_v41, %v636_v36  ;;  %v666_v44 = vshrl.u32 %v655_v41, 16  ;;  %v813_v38 = vld [vmem:[#allocation4] sm:$0xff] }
 0x121   : > { %v898_v42 = vsel %vm877_vm4, %v661_v39, 0 }
 0x122   : > { %907 = vmatpush.bf16.msrb.mxu1 %v898_v42  ;;  %v917_v46 = vsel %vm877_vm4, %v664_v43, 0  ;;  %v667_v16 = vpack.i.b16 %v666_v44, %v665_v40 }
 0x123   : > { %926 = vmatpush.bf16.msrb.mxu2 %v917_v46  ;;  %v815_v46 = vld [vmem:[#allocation4 + $0x10] sm:$0xff] }
 0x124   : > { %v936_v48 = vsel %vm877_vm4, %v667_v16, 0  ;;  %v816_v16 = vld [vmem:[#allocation4 + $0x18] sm:$0xff] }
 0x125   : > { %945 = vmatpush.bf16.msrb.mxu3 %v936_v48 }
 0x131   : > { %v1517_v63 = vpop.f32.mrf.mxu0 }
 0x132   : > { %v753_v4 = vsel %vm274_vm1, %v1517_v63, -inf }
 0x133   : > { %v1524_v6 = vpop.f32.mrf.mxu1  ;;  %754 = vmax.xlane.f32.xlu2 %v753_v4 }
 0x134   : > { %v756_v24 = vsel %vm274_vm1, %v1524_v6, -inf }
 0x139   : > { %v690_v21 = vpop.f32.mrf.mxu0 }
 0x13a   : > { %v1536_v23 = vpop.f32.mrf.mxu2 }
 0x13b   : > { %v709_v26 = vpop.f32.mrf.mxu1  ;;  %757 = vmax.xlane.f32.xlu2 %v756_v24  ;;  %v759_v27 = vsel %vm274_vm1, %v1536_v23, -inf }
 0x13c   : > { %v1544_v31 = vpop.f32.mrf.mxu3  ;;  %760 = vmax.xlane.f32.xlu0 %v759_v27 }
 0x13d   : > { %v762_v32 = vsel %vm274_vm1, %v1544_v31, -inf }
 0x13e   : > { %763 = vmax.xlane.f32.xlu1 %v762_v32 }
 0x142   : > { %v728_v45 = vpop.f32.mrf.mxu2 }
 0x144   : > { %v747_v47 = vpop.f32.mrf.mxu3 }
 0x1a6   : > { %v755_v52 = vpop.xlane.xlu2 %754 }
 0x1a7   : > { %v1565_v53 = vmax.f32 %v1562_v51, %v755_v52 }
 0x1a9   : > { %v769_v54 = vsub.f32 %v1562_v51, %v1565_v53  ;;  %959 = vst.msk [vmem:[#allocation3] sm:$0xff] %vm265_vm3, %v1565_v53  ;;  %783 = vperm.xlu2 %1295, %v1565_v53   ;;  %v814_v53 = vld [vmem:[#allocation4 + $0x8] sm:$0xff] }
 0x1ab   : > { %v773_v34 = vmul.f32 1.442695, %v769_v54 }
 0x1ae   : > { %v758_v57 = vpop.xlane.xlu2 %757 }
 0x1af   : > { %v766_v58 = vmax.f32 %v750_v55, %v758_v57  ;;  %v761_v59 = vpop.xlane.xlu0 %760 }
 0x1b0   : > { %v767_v61 = vmax.f32 %v751_v56, %v761_v59 }
 0x1b1   : > { %v770_v62 = vsub.f32 %v750_v55, %v766_v58  ;;  %960 = vst.msk [vmem:[#allocation3 + $0x8] sm:$0xff] %vm265_vm3, %v766_v58  ;;  %v764_v0 = vpop.xlane.xlu1 %763 }
 0x1b2   : > { %v771_v1 = vsub.f32 %v751_v56, %v767_v61  ;;  %961 = vst.msk [vmem:[#allocation3 + $0x10] sm:$0xff] %vm265_vm3, %v767_v61  ;;  %v768_v2 = vmax.f32 %v752_v60, %v764_v0  ;;  %793 = vperm.xlu0 %1294, %v767_v61   ;;  %v843_v0 = vld [vmem:[#allocation5 + $0x8] sm:$0xff] }
 0x1b3   : > { %v775_v13 = vmul.f32 1.442695, %v770_v62 }
 0x1b4   : > { %v772_v3 = vsub.f32 %v752_v60, %v768_v2  ;;  %962 = vst.msk [vmem:[#allocation3 + $0x18] sm:$0xff] %vm265_vm3, %v768_v2  ;;  %798 = vperm.xlu1 %1296, %v768_v2   ;;  %v777_v12 = vmul.f32 1.442695, %v771_v1  ;;  %v844_v60 = vld [vmem:[#allocation5 + $0x10] sm:$0xff] }
 0x1b6   : > { %v779_v35 = vmul.f32 1.442695, %v772_v3 }
 0x1bc   : > { %788 = vperm.xlu1 %1296, %v766_v58  }
 0x203   : > { %v784_v4 = vpop.permute.xlu2 %783 }
 0x204   : > { %v801_v5 = vsub.f32 %v1517_v63, %v784_v4 }
 0x206   : > { %v805_v7 = vmul.f32 1.442695, %v801_v5 }
 0x208   : > { %1297 = vpow2.f32 %v805_v7 }
 0x209   : > { %1299 = vpow2.f32 %v777_v12  ;;  %v842_v12 = vld [vmem:[#allocation5] sm:$0xff] }
 0x20a   : > { %1301 = vpow2.f32 %v775_v13 }
 0x20e   : > { %v1298_v8 = vpop.eup %1297 }
 0x20f   : > { %v821_v9 = vsel %vm274_vm1, %v1298_v8, 0.0  ;;  %v870_v10 = vpack.c.bf16 %v1298_v8, %v1298_v8  ;;  %v1300_v18 = vpop.eup %1299 }
 0x210   : > { %822 = vadd.xlane.f32.xlu2 %v821_v9  ;;  %v1302_v21 = vpop.eup %1301  ;;  %v819_v47 = vmul.f32 %v1300_v18, %v815_v46 }
 0x211   : > { %1253 = vmatmul.msk.bf16.vlgmr.msrb.gmra.mxu0 %vm274_vm1, %v870_v10  ;;  %v818_v55 = vmul.f32 %v1302_v21, %v814_v53 }
 0x224   : > { %v794_v14 = vpop.permute.xlu0 %793 }
 0x225   : > { %v803_v15 = vsub.f32 %v1536_v23, %v794_v14 }
 0x226   : > { %v799_v17 = vpop.permute.xlu1 %798 }
 0x227   : > { %v809_v19 = vmul.f32 1.442695, %v803_v15  ;;  %v804_v63 = vsub.f32 %v1544_v31, %v799_v17 }
 0x228   : > { %858 = vperm.xlu2 %1295, %v1300_v18  }
 0x229   : > { %1303 = vpow2.f32 %v809_v19  ;;  %v811_v20 = vmul.f32 1.442695, %v804_v63  ;;  %v845_v19 = vld [vmem:[#allocation5 + $0x18] sm:$0xff] }
 0x22b   : > { %1305 = vpow2.f32 %v811_v20 }
 0x22e   : > { %v789_v22 = vpop.permute.xlu1 %788 }
 0x22f   : > { %v1304_v24 = vpop.eup %1303  ;;  %v802_v25 = vsub.f32 %v1524_v6, %v789_v22 }
 0x230   : > { %853 = vperm.xlu2 %1295, %v1302_v21   ;;  %v827_v26 = vsel %vm274_vm1, %v1304_v24, 0.0  ;;  %v872_v27 = vpack.c.bf16 %v1304_v24, %v1304_v24 }
 0x231   : > { %v1306_v23 = vpop.eup %1305  ;;  %v807_v28 = vmul.f32 1.442695, %v802_v25  ;;  %828 = vadd.xlane.f32.xlu0 %v827_v26 }
 0x232   : > { %1255 = vmatmul.msk.bf16.vlgmr.msrb.gmra.mxu2 %vm274_vm1, %v872_v27  ;;  %v830_v29 = vsel %vm274_vm1, %v1306_v23, 0.0  ;;  %v873_v30 = vpack.c.bf16 %v1306_v23, %v1306_v23 }
 0x233   : > { %1307 = vpow2.f32 %v807_v28  ;;  %831 = vadd.xlane.f32.xlu1 %v830_v29 }
 0x234   : > { %1256 = vmatmul.msk.bf16.vlgmr.msrb.gmra.mxu3 %vm274_vm1, %v873_v30  ;;  %1309 = vpow2.f32 %v773_v34 }
 0x235   : > { %1311 = vpow2.f32 %v779_v35 }
 0x239   : > { %v1308_v31 = vpop.eup %1307 }
 0x23a   : > { %v824_v32 = vsel %vm274_vm1, %v1308_v31, 0.0  ;;  %v871_v6 = vpack.c.bf16 %v1308_v31, %v1308_v31  ;;  %v1310_v36 = vpop.eup %1309 }
 0x23b   : > { %825 = vadd.xlane.f32.xlu0 %v824_v32  ;;  %v1312_v37 = vpop.eup %1311  ;;  %v817_v39 = vmul.f32 %v1310_v36, %v813_v38 }
 0x23c   : > { %1254 = vmatmul.msk.bf16.vlgmr.msrb.gmra.mxu1 %vm274_vm1, %v871_v6  ;;  %v820_v50 = vmul.f32 %v1312_v37, %v816_v16 }
 0x24c   : > { %848 = vperm.xlu1 %1296, %v1310_v36  }
 0x24f   : > { %863 = vperm.xlu0 %1294, %v1312_v37  }
 0x283   : > { %v823_v40 = vpop.xlane.xlu2 %822 }
 0x284   : > { %v833_v41 = vadd.f32 %v823_v40, %v817_v39 }
 0x286   : > { %838 = vst.msk [vmem:[#allocation4] sm:$0xff] %vm265_vm3, %v833_v41 }
 0x28b   : > { %v859_v54 = vpop.permute.xlu2 %858 }
 0x28c   : > { %v868_v61 = vmul.f32 %v859_v54, %v844_v60 }
 0x28d   : > { %v970_v42 = vld [vmem:[#allocation4] sm:$0xff] }
 0x28e   : > { %v890_v43 = vpop.f32.mrf.mxu0  ;;  %1313 = vrcp.f32 %v970_v42 }
 0x293   : > { %v854_v1 = vpop.permute.xlu2 %853 }
 0x294   : > { %v1314_v44 = vpop.eup %1313  ;;  %v867_v7 = vmul.f32 %v854_v1, %v843_v0 }
 0x295   : > { %980 = vperm.xlu1 %1296, %v1314_v44  }
 0x296   : > { %v892_v45 = vpop.f32.mrf.mxu0 }
 0x2a4   : > { %v829_v48 = vpop.xlane.xlu0 %828 }
 0x2a5   : > { %v835_v49 = vadd.f32 %v829_v48, %v819_v47 }
 0x2a6   : > { %v832_v51 = vpop.xlane.xlu1 %831 }
 0x2a7   : > { %840 = vst.msk [vmem:[#allocation4 + $0x10] sm:$0xff] %vm265_vm3, %v835_v49  ;;  %v836_v52 = vadd.f32 %v832_v51, %v820_v50 }
 0x2a9   : > { %841 = vst.msk [vmem:[#allocation4 + $0x18] sm:$0xff] %vm265_vm3, %v836_v52 }
 0x2ae   : > { %v826_v56 = vpop.xlane.xlu0 %825  ;;  %v972_v57 = vld [vmem:[#allocation4 + $0x10] sm:$0xff] }
 0x2af   : > { %v834_v58 = vadd.f32 %v826_v56, %v818_v55  ;;  %1315 = vrcp.f32 %v972_v57 }
 0x2b0   : > { %v973_v59 = vld [vmem:[#allocation4 + $0x18] sm:$0xff] }
 0x2b1   : > { %839 = vst.msk [vmem:[#allocation4 + $0x8] sm:$0xff] %vm265_vm3, %v834_v58  ;;  %1317 = vrcp.f32 %v973_v59 }
 0x2b5   : > { %v1316_v62 = vpop.eup %1315  ;;  %v928_v2 = vpop.f32.mrf.mxu2 }
 0x2b6   : > { %v953_v3 = vadd.f32 %v928_v2, %v868_v61  ;;  %990 = vperm.xlu0 %1294, %v1316_v62  }
 0x2b7   : > { %v1318_v4 = vpop.eup %1317  ;;  %v947_v5 = vpop.f32.mrf.mxu3 }
 0x2b8   : > { %957 = vst.msk [vmem:[#allocation5 + $0x10] sm:$0xff] %vm274_vm1, %v953_v3  ;;  %995 = vperm.xlu2 %1295, %v1318_v4   ;;  %v971_v8 = vld [vmem:[#allocation4 + $0x8] sm:$0xff] }
 0x2b9   : > { %v909_v9 = vpop.f32.mrf.mxu1  ;;  %1319 = vrcp.f32 %v971_v8 }
 0x2ba   : > { %v952_v10 = vadd.f32 %v909_v9, %v867_v7 }
 0x2bc   : > { %956 = vst.msk [vmem:[#allocation5 + $0x8] sm:$0xff] %vm274_vm1, %v952_v10 }
 0x2bd   : > { %v930_v13 = vpop.f32.mrf.mxu2 }
 0x2be   : > { %v849_v14 = vpop.permute.xlu1 %848 }
 0x2bf   : > { %v1320_v15 = vpop.eup %1319  ;;  %v866_v17 = vmul.f32 %v849_v14, %v842_v12  ;;  %v949_v18 = vpop.f32.mrf.mxu3  ;;  %v968_v27 = vld [vmem:[#allocation5 + $0x10] sm:$0xff] }
 0x2c0   : > { %985 = vperm.xlu0 %1294, %v1320_v15  }
 0x2c1   : > { %v951_v63 = vadd.f32 %v890_v43, %v866_v17  ;;  %v911_v20 = vpop.f32.mrf.mxu1  ;;  %v864_v21 = vpop.permute.xlu0 %863 }
 0x2c2   : > { %v869_v22 = vmul.f32 %v864_v21, %v845_v19 }
 0x2c3   : > { %955 = vst.msk [vmem:[#allocation5] sm:$0xff] %vm274_vm1, %v951_v63  ;;  %v967_v38 = vld [vmem:[#allocation5 + $0x8] sm:$0xff] }
 0x2c4   : > { %v954_v24 = vadd.f32 %v947_v5, %v869_v22 }
 0x2c6   : > { %958 = vst.msk [vmem:[#allocation5 + $0x18] sm:$0xff] %vm274_vm1, %v954_v24 }
 0x2ca   : > { %v966_v28 = vld [vmem:[#allocation5] sm:$0xff] }
 0x2cd   : > { %v969_v32 = vld [vmem:[#allocation5 + $0x18] sm:$0xff] }
 0x307   : > { %v981_v25 = vpop.permute.xlu1 %980 }
 0x308   : > { %v998_v29 = vmul.f32 %v981_v25, %v966_v28 }
 0x30a   : > { %v1005_v6 = vrot.slane %v998_v29, 4 }
 0x312   : > { %v996_v31 = vpop.permute.xlu2 %995 }
 0x313   : > { %v1001_v34 = vmul.f32 %v996_v31, %v969_v32 }
 0x315   : > { %v1015_v40 = vrot.slane %v1001_v34, 4 }
 0x328   : > { %v991_v26 = vpop.permute.xlu0 %990 }
 0x329   : > { %v1000_v23 = vmul.f32 %v991_v26, %v968_v27 }
 0x32b   : > { %v1002_v30 = vrot.slane %v1000_v23, 4  ;;  %v1006_v36 = vsel %vm310_vm0, %v1000_v23, %v1005_v6 }
 0x32c   : > { %v1014_v42 = vperm.slane %v1006_v36, %v1410_v11 }
 0x32d   : > { %v1004_v35 = vsel %vm310_vm0, %v1002_v30, %v998_v29 }
 0x32e   : > { %v1010_v37 = vperm.slane %v1004_v35, %v1410_v11  ;;  %v1041_v47 = vrot.slane %v1014_v42, 4 }
 0x330   : > { %v1029_v45 = vrot.slane %v1010_v37, 4 }
 0x332   : > { %v986_v39 = vpop.permute.xlu0 %985 }
 0x333   : > { %v999_v41 = vmul.f32 %v986_v39, %v967_v38 }
 0x335   : > { %v1016_v43 = vsel %vm310_vm0, %v1015_v40, %v999_v41  ;;  %v1017_v44 = vrot.slane %v999_v41, 4 }
 0x336   : > { %v1022_v46 = vperm.slane %v1016_v43, %v1410_v11 }
 0x337   : > { %v1018_v16 = vsel %vm310_vm0, %v1001_v34, %v1017_v44 }
 0x338   : > { %v1026_v48 = vperm.slane %v1018_v16, %v1410_v11  ;;  %v1027_v49 = vrot.slane %v1022_v46, 4  ;;  %v1030_v50 = vsel %vm310_vm0, %v1022_v46, %v1029_v45 }
 0x339   : > { %v1038_v51 = vperm.slane %v1030_v50, %v1416_v33 }
 0x33a   : > { %v1028_v52 = vsel %vm310_vm0, %v1027_v49, %v1010_v37  ;;  %v1039_v53 = vrot.slane %v1026_v48, 4  ;;  %v1042_v54 = vsel %vm310_vm0, %v1026_v48, %v1041_v47 }
 0x33b   : > { %v1034_v55 = vperm.slane %v1028_v52, %v1416_v33  ;;  %v1050_v56 = vperm.slane %v1042_v54, %v1416_v33  ;;  %v1053_v57 = vrot.slane %v1038_v51, 4 }
 0x33c   : > { %v1040_v58 = vsel %vm310_vm0, %v1039_v53, %v1014_v42 }
 0x33d   : > { %v1046_v59 = vperm.slane %v1040_v58, %v1416_v33  ;;  %v1051_v60 = vrot.slane %v1034_v55, 4  ;;  %v1054_v61 = vsel %vm310_vm0, 0.0, %v1053_v57  ;;  %v1057_v62 = vrot.slane %v1050_v56, 4 }
 0x33e   : > { %v1059_v0 = vsel %vm310_vm0, %v1053_v57, %v1034_v55  ;;  %v1064_v1 = vrot.slane %v1054_v61, 4 }
 0x33f   : > { %v1058_v2 = vsel %vm310_vm0, 0.0, %v1057_v62  ;;  %v1052_v3 = vsel %vm310_vm0, 0.0, %v1051_v60  ;;  %v1055_v4 = vrot.slane %v1046_v59, 4  ;;  %v1063_v5 = vperm.slane %v1059_v0, %v1410_v11 }
 0x340   : > { %v1075_v7 = vrot.slane %v1058_v2, 4  ;;  %v1065_v8 = vsel %vm310_vm0, %v1064_v1, %v1052_v3  ;;  %v1070_v9 = vsel %vm310_vm0, %v1057_v62, %v1046_v59 }
 0x341   : > { %v1056_v10 = vsel %vm310_vm0, 0.0, %v1055_v4  ;;  %v1069_v12 = vperm.slane %v1065_v8, %v1410_v11  ;;  %v1074_v13 = vperm.slane %v1070_v9, %v1410_v11  ;;  %v1083_v14 = vrot.slane %v1063_v5, 4 }
 0x342   : > { %v1076_v15 = vsel %vm310_vm0, %v1075_v7, %v1056_v10 }
 0x343   : > { %v1080_v17 = vperm.slane %v1076_v15, %v1410_v11  ;;  %v1084_v18 = vsel %vm310_vm0, %v1069_v12, %v1083_v14  ;;  %v1095_v19 = vrot.slane %v1074_v13, 4  ;;  %v1081_v63 = vrot.slane %v1069_v12, 4 }
 0x344   : > { %v1092_v20 = vperm.slane %v1084_v18, %v1416_v33 }
 0x345   : > { %v1096_v21 = vsel %vm310_vm0, %v1080_v17, %v1095_v19  ;;  %v1082_v22 = vsel %vm310_vm0, %v1081_v63, %v1063_v5  ;;  %v1093_v24 = vrot.slane %v1080_v17, 4 }
 0x346   : > { %v1104_v25 = vperm.slane %v1096_v21, %v1416_v33  ;;  %v1111_v26 = vrot.slane %v1092_v20, 4  ;;  %v1088_v27 = vperm.slane %v1082_v22, %v1416_v33 }
 0x347   : > { %v1094_v23 = vsel %vm310_vm0, %v1093_v24, %v1074_v13 }
 0x348   : > { %v1112_v11 = vsel %vm310_vm0, %v1104_v25, %v1111_v26  ;;  %v1109_v28 = vrot.slane %v1104_v25, 4  ;;  %v1100_v29 = vperm.slane %v1094_v23, %v1416_v33  ;;  %v1107_v30 = vrot.slane %v1088_v27, 4 }
 0x349   : > { %1122 = vrot.lane.b32.xlu0 %v1112_v11, %s1353_s29 }
 0x34a   : > { %v1110_v31 = vsel %vm310_vm0, %v1109_v28, %v1092_v20  ;;  %v1105_v32 = vrot.slane %v1100_v29, 4  ;;  %v1108_v6 = vsel %vm310_vm0, %v1100_v29, %v1107_v30 }
 0x34b   : > { %1118 = vrot.lane.b32.xlu2 %v1110_v31, %s1354_s30  ;;  %1114 = vrot.lane.b32.xlu1 %v1108_v6, %s1355_s4 }
 0x34c   : > { %v1106_v34 = vsel %vm310_vm0, %v1105_v32, %v1088_v27 }
 0x3a5   : > { %v1119_v36 = vpop.permute.xlu2 %1118 }
 0x3bb   : > { %v1123_v37 = vpop.permute.xlu0 %1122 }
 0x3bd   : > { %v1115_v35 = vpop.permute.xlu1 %1114 }
 0x3be   : > { %v1125_v33 = vsel %vm274_vm1, %v1106_v34, %v1115_v35 }
 0x3bf   : > { %v1127_v38 = vsel %vm1126_vm5, %v1125_v33, %v1119_v36 }
 0x3c0   : > { %v1129_v39 = vsel %vm1128_vm6, %v1127_v38, %v1123_v37 }
 0x3c1   : > { %v1130_v40 = vpack.c.bf16 %v1129_v39, %v1129_v39 }
 0x3c3   : > { %1132 = vst.msk [vmem:[%s259_s7] sm:$0xf] %vm1131_vm7, %v1130_v40 }
 0x3c4 PF: > { %s13_s14 = sadd.s32 1, %s1343_s14   ;;  %s1656_s12 = smov %s1339_s13 }
 0x3c5   : > { %p10_p5 = scmp.ge.s32.totalorder %s13_s14, 4   ;;  %s1657_s13 = smov %s1659_s15 }
 0x3c7   :  { %12 = sbr.rel (!%p10_p5) target bundleno = 2 (0x2), region = 76 }

// kernel: audio_encoder_forward.25
= control target key start
LH: loop header
LB: loop body
LE: loop exit
PB: predicated region body
PF: predicated region fallthrough
CT: control target
= control target key end

     0   :  { %vm19_vm0 = vcmask 261120   ;;  %s187_s0 = inlined_call_operand.vmem [shape: bf16[16,32], index: 0, kind: input, shape index: {}]   ;;  %s188_s1 = inlined_call_operand.vmem [shape: f32[1,32], index: 1, kind: input, shape index: {}]   ;;  %s189_s2 = inlined_call_operand.vmem [shape: f32[1,32], index: 2, kind: input, shape index: {}]   ;;  %s190_s3 = inlined_call_operand.hbm [shape: f32[16,32], index: 3, kind: output, shape index: {}]  }
   0x1   :  { %v104_v0 = vld [vmem:[%s187_s0] sm:$0xff]  }
   0x2   :  { %v105_v1 = vunpack.c.l.bf16 %v104_v0 }
   0x3   :  { %8 = vsyncpa [#allocation3], 0  ;;  %v106_v3 = vunpack.c.h.bf16 %v104_v0  ;;  %v145_v5 = vmov 32.0   ;;  %v111_v36 = vld [vmem:[%s188_s1] ss:$0 sm:$0xff]  ;;  %s146_s1 = smov [#allocation2]  }
   0x4   :  { %v20_v2 = vsel %vm19_vm0, %v105_v1, 0.0  ;;  %113 = vrcp.f32 %v145_v5  ;;  %v112_v40 = vld [vmem:[%s189_s2] ss:$0 sm:$0xff]  ;;  %s89_s17 = sshll.u32 %s146_s1, 4  ;;  %s91_s20 = sshll.u32 %s190_s3, 4  ;;  %s90_s17 = int_to_ptr.vmem [resolvable:$true] %s89_s17  ;;  %s92_s20 = int_to_ptr.hbm [resolvable:$true] %s91_s20 }
   0x5   :  { %21 = vadd.xlane.f32.xlu0 %v20_v2  ;;  %v23_v4 = vsel %vm19_vm0, %v106_v3, 0.0  ;;  %s147_s2 = smov 128   ;;  %s148_s21 = smov 8  }
   0xa   :  { %v114_v6 = vpop.eup %113 }
   0xb   :  { %v27_v7 = vmul.f32 32.0, %v114_v6  ;;  %vm31_vm1 = vweird.f32 %v114_v6 }
   0xd   :  { %24 = vadd.xlane.f32.xlu0 %v23_v4  ;;  %v28_v8 = vsub.f32 1.0, %v27_v7 }
   0xf   :  { %v29_v9 = vmul.f32 %v114_v6, %v28_v8 }
  0x11   :  { %v30_v10 = vadd.f32 %v114_v6, %v29_v9 }
  0x13   :  { %v32_v11 = vsel %vm31_vm1, %v114_v6, %v30_v10 }
  0x78   :  { %v22_v12 = vpop.xlane.xlu0 %21 }
  0x79   :  { %v33_v13 = vmul.f32 %v32_v11, %v22_v12 }
  0x7b   :  { %v35_v14 = vsub.f32 %v105_v1, %v33_v13 }
  0x7d   :  { %v37_v15 = vmul.f32 %v35_v14, %v35_v14 }
  0x7f   :  { %v39_v16 = vsel %vm19_vm0, %v37_v15, 0.0 }
  0x80   :  { %40 = vadd.xlane.f32.xlu1 %v39_v16  ;;  %v25_v17 = vpop.xlane.xlu0 %24 }
  0x81   :  { %v34_v18 = vmul.f32 %v32_v11, %v25_v17 }
  0x83   :  { %v36_v19 = vsub.f32 %v106_v3, %v34_v18 }
  0x85   :  { %v38_v20 = vmul.f32 %v36_v19, %v36_v19 }
  0x87   :  { %v42_v21 = vsel %vm19_vm0, %v38_v20, 0.0 }
  0x88   :  { %43 = vadd.xlane.f32.xlu1 %v42_v21 }
  0xf3   :  { %v41_v22 = vpop.xlane.xlu1 %40 }
  0xf4   :  { %v45_v23 = vmul.f32 %v41_v22, %v32_v11 }
  0xf6   :  { %v47_v24 = vadd.f32 1e-05, %v45_v23 }
  0xf8   :  { %115 = vrsqrt.f32 %v47_v24  ;;  %vm55_vm3 = vweird.f32 %v47_v24 }
  0xfb   :  { %v44_v25 = vpop.xlane.xlu1 %43 }
  0xfc   :  { %v46_v26 = vmul.f32 %v44_v25, %v32_v11 }
  0xfe   :  { %v116_v27 = vpop.eup %115  ;;  %v48_v28 = vadd.f32 1e-05, %v46_v26 }
  0xff   :  { %v50_v29 = vmul.f32 %v116_v27, %v47_v24  ;;  %vm56_vm2 = vweird.f32 %v116_v27 }
 0x100   :  { %117 = vrsqrt.f32 %v48_v28  ;;  %vm57_vm4 = vmor %vm55_vm3, %vm56_vm2  ;;  %vm65_vm6 = vweird.f32 %v48_v28 }
 0x101   :  { %v51_v30 = vmul.f32 %v116_v27, %v50_v29 }
 0x103   :  { %v52_v31 = vmul.f32 0.5, %v51_v30 }
 0x105   :  { %v53_v32 = vsub.f32 1.5, %v52_v31 }
 0x106   :  { %v118_v33 = vpop.eup %117 }
 0x107   :  { %v54_v34 = vmul.f32 %v116_v27, %v53_v32  ;;  %v60_v35 = vmul.f32 %v118_v33, %v48_v28  ;;  %vm66_vm5 = vweird.f32 %v118_v33 }
 0x108   :  { %vm67_vm7 = vmor %vm65_vm6, %vm66_vm5 }
 0x109   :  { %v58_v37 = vsel %vm57_vm4, %v116_v27, %v54_v34  ;;  %v61_v38 = vmul.f32 %v118_v33, %v60_v35 }
 0x10a   :  { %v69_v39 = vmul.f32 %v58_v37, %v35_v14 }
 0x10b   :  { %v62_v41 = vmul.f32 0.5, %v61_v38 }
 0x10c   :  { %v75_v42 = vmul.f32 %v111_v36, %v69_v39 }
 0x10d   :  { %v63_v43 = vsub.f32 1.5, %v62_v41 }
 0x10e   :  { %v81_v44 = vadd.f32 %v112_v40, %v75_v42 }
 0x10f   :  { %v64_v45 = vmul.f32 %v118_v33, %v63_v43 }
 0x110   :  { %83 = vst.msk [vmem:[#allocation2] sm:$0xff] %vm19_vm0, %v81_v44 }
 0x111   :  { %v68_v46 = vsel %vm67_vm7, %v118_v33, %v64_v45 }
 0x112   :  { %v70_v47 = vmul.f32 %v68_v46, %v36_v19 }
 0x114   :  { %v76_v48 = vmul.f32 %v111_v36, %v70_v47 }
 0x116   :  { %v82_v49 = vadd.f32 %v112_v40, %v76_v48 }
 0x118   :  { %84 = vst.msk [vmem:[#allocation2 + $0x8] sm:$0xff] %vm19_vm0, %v82_v49 }
 0x119   :  { %97 = dma.vmem_to_hbm [thread:$0]  %s90_s17, 256, %s92_s20, [#allocation3], %s147_s2, %s147_s2, %s148_s21  }
 0x11a   :  { %143 = dma.done.wait [#allocation3], 256  }
 0x11b   :  { %144 = vsyncadd [#allocation3], 4294967040 }
 0x11c   :  { %102 = vsyncpa [#allocation3], 1 }

</bundles_post_ra>
